<compile_context>
chip_gen: v5e
topology: v5e:2x2
jax: 0.10.0
libtpu: 0.0.40
codegen_flags: <defaults>
</compile_context>

<pallas_src>
import functools

import jax
import jax.numpy as jnp
from jax.experimental import pallas as pl
from jax.experimental.pallas import tpu as pltpu


# Every conv other than the three fused 1x1s, all "same"-padded:
#   (param name, KH, KW, dilation).  Input channels: Cout (branch convs),
#   2*Cout for the cat conv.
_BRANCH_CONVS = (
    ("b2_1", 1, 5, 1),
    ("b2_2", 5, 1, 1),
    ("b2_3", 3, 3, 5),
    ("b3_1", 1, 7, 1),
    ("b3_2", 7, 1, 1),
    ("b3_3", 3, 3, 7),
)
_CAT_CONV = ("cat", 3, 3, 1)


def _round_up(x, m):
    return ((x + m - 1) // m) * m


# ----------------------------------------------------------------------------
# Packed parameter slab: every conv weight tap-folded to (Cout, KH*KW*Cin) and
# stacked along sublanes (8-aligned row starts); the per-output-channel bias
# sits in one extra column.  One slab == one DMA instead of 21 tiny tiles.
# ----------------------------------------------------------------------------
def _slab_layout(Cin, Cout):
    layout = {}
    row = 0
    layout["1x1"] = (row, 3 * Cout, Cin)        # [branch2_0; branch3_0; conv_res]
    row = _round_up(row + 3 * Cout, 8)
    for name, KH, KW, _ in _BRANCH_CONVS:
        layout[name] = (row, Cout, KH * KW * Cout)
        row = _round_up(row + Cout, 8)
    name, KH, KW, _ = _CAT_CONV
    layout[name] = (row, Cout, KH * KW * 2 * Cout)
    row = _round_up(row + Cout, 8)
    bias_col = max(nc for _, _, nc in layout.values())
    return layout, row, bias_col + 1, bias_col


def _fold_weight(w_hwio):
    """HWIO (KH, KW, Cin, Cout) -> tap-folded (Cout, KH*KW*Cin)."""
    KH, KW, Cin, Cout = w_hwio.shape
    return jnp.transpose(w_hwio, (3, 0, 1, 2)).reshape(Cout, KH * KW * Cin)


def _pack_params(params, layout, n_rows, n_cols, bias_col):
    slab = jnp.zeros((n_rows, n_cols), jnp.float32)

    def put(slab, name, w2d, b):
        r0, nr, nc = layout[name]
        slab = slab.at[r0:r0 + nr, :nc].set(w2d.astype(jnp.float32))
        return slab.at[r0:r0 + nr, bias_col].set(b.astype(jnp.float32))

    slab = put(
        slab, "1x1",
        jnp.concatenate([_fold_weight(params["b2_0"][0]),
                         _fold_weight(params["b3_0"][0]),
                         _fold_weight(params["res"][0])], axis=0),
        jnp.concatenate([params["b2_0"][1], params["b3_0"][1], params["res"][1]]))
    for name, *_ in _BRANCH_CONVS + (_CAT_CONV,):
        slab = put(slab, name, _fold_weight(params[name][0]), params[name][1])
    return slab


# ----------------------------------------------------------------------------
# Fused RFB kernel.
# ----------------------------------------------------------------------------
def _make_rfb_kernel(W, HW, P, M, Ltot, nb, Cin, Cout, layout, bias_col):
    f32 = jnp.float32
    bf16 = jnp.bfloat16

    def kernel(x_ref, p_ref, out_ref):
        x = x_ref[0].astype(f32)                                   # (Cin, Ltot)

        # Per-lane coordinates of the packed layout (built once, reused).
        col = jax.lax.broadcasted_iota(jnp.int32, (1, Ltot), 1)
        jpos = col                                                 # col mod P, no vector div
        for k in range(1, nb):
            jpos = jnp.where(col >= k * P, col - k * P, jpos)
        wcol = jpos % W                                            # in-image column
        valid = jnp.broadcast_to(jpos < HW, (Cout, Ltot))          # non-margin lanes

        mask_cache = {}

        def wmask(s_w, rows):
            key = (s_w, rows)
            if key not in mask_cache:
                m = (wcol + s_w >= 0) & (wcol + s_w < W)
                mask_cache[key] = jnp.broadcast_to(m, (rows, Ltot))
            return mask_cache[key]

        def conv(inp, name, KH, KW, dil):
            """'Same' conv of (C, Ltot) -> (n_out, Ltot) f32; one MXU matmul."""
            C = inp.shape[0]
            r0, nr, nc = layout[name]
            assert nc == KH * KW * C
            w = p_ref[r0:r0 + nr, :nc].astype(bf16)                # (n_out, KH*KW*C)
            b = p_ref[r0:r0 + nr, bias_col:bias_col + 1]           # (n_out, 1) f32
            if KH == 1 and KW == 1:
                patch = inp
            else:
                # Lead/trail zero margin so every tap is a static in-bounds
                # slice; per-image trailing margins in `inp` handle H edges.
                z = jnp.zeros((C, M), f32)
                xpad = jnp.concatenate([z, inp, z], axis=1)        # (C, Ltot+2M)
                pieces = []
                for kh in range(KH):
                    s_h = (kh - (KH - 1) // 2) * dil
                    for kw in range(KW):
                        s_w = (kw - (KW - 1) // 2) * dil
                        s = s_h * W + s_w
                        piece = inp if s == 0 else xpad[:, M + s:M + s + Ltot]
                        if s_w != 0:                               # W-boundary mask
                            piece = jnp.where(wmask(s_w, C), piece, 0.0)
                        pieces.append(piece)
                patch = jnp.concatenate(pieces, axis=0)            # (KH*KW*C, Ltot)
            acc = jnp.dot(w, patch.astype(bf16), preferred_element_type=f32)
            return acc + b

        # Three 1x1 convs reading x (branch2[0], branch3[0], conv_res) fused
        # into one (3*Cout, Cin) matmul, then row-sliced.
        y = conv(x, "1x1", 1, 1, 1)                                # (3*Cout, Ltot)
        x2, x3, res = y[:Cout], y[Cout:2 * Cout], y[2 * Cout:]

        # branch2: 1x5 -> 5x1 -> 3x3 dil 5.  Margin lanes are re-zeroed after
        # each conv so the next conv's H-boundary taps read zeros.
        x2 = jnp.where(valid, conv(x2, "b2_1", 1, 5, 1), 0.0)
        x2 = jnp.where(valid, conv(x2, "b2_2", 5, 1, 1), 0.0)
        x2 = jnp.where(valid, conv(x2, "b2_3", 3, 3, 5), 0.0)

        # branch3: 1x7 -> 7x1 -> 3x3 dil 7.
        x3 = jnp.where(valid, conv(x3, "b3_1", 1, 7, 1), 0.0)
        x3 = jnp.where(valid, conv(x3, "b3_2", 7, 1, 1), 0.0)
        x3 = jnp.where(valid, conv(x3, "b3_3", 3, 3, 7), 0.0)

        # conv_cat over channel-concat [x2; x3] (one 8-sublane tile), then the
        # residual 1x1 add and ReLU, stored lane-dense.
        xc = conv(jnp.concatenate([x2, x3], axis=0), "cat", 3, 3, 1)
        out_ref[0] = jnp.maximum(xc + res, 0.0).astype(out_ref.dtype)

    return kernel


# ----------------------------------------------------------------------------
# Wrapper: NCHW in -> NCHW out, single pallas_call.
# ----------------------------------------------------------------------------
@functools.partial(jax.jit, static_argnames=("num_blocks",))
def rfb_pruned_forward(params, x_nchw, num_blocks=None):
    N, Cin, H, W = x_nchw.shape
    HW = H * W
    Cout = params["res"][0].shape[-1]

    # Zero margin per image: must cover the largest flattened tap shift
    # ph*W + pw (here 7*16 + 7 = 119); rounded up to a lane multiple.
    max_shift = max(dil * ((KH - 1) // 2) * W + dil * ((KW - 1) // 2)
                    for _, KH, KW, dil in _BRANCH_CONVS + (_CAT_CONV,))
    M = _round_up(max(max_shift, 1), 128)
    assert M >= max_shift
    P = HW + M

    if num_blocks is None:
        # 2 blocks -> v7x's two TensorCores each take half the batch; on
        # v5e/v6e (single TC) pass num_blocks=1 to fold the whole batch into
        # one grid step (saves the ~0.35us per-step overhead of the 2nd step).
        num_blocks = 2 if (N % 2 == 0 and N >= 2) else 1
    assert N % num_blocks == 0
    nb = N // num_blocks                      # images folded into lanes per block
    Ltot = nb * P

    # Batch folded into the lane axis: (num_blocks, Cin, nb*(HW + M)), with a
    # zero margin after every image (handles H edges and image boundaries).
    x_p = jnp.pad(x_nchw.reshape(N, Cin, HW).astype(jnp.float32),
                  ((0, 0), (0, 0), (0, M)))
    x_p = x_p.reshape(num_blocks, nb, Cin, P).transpose(0, 2, 1, 3)
    x_p = x_p.reshape(num_blocks, Cin, Ltot)

    layout, n_rows, n_cols, bias_col = _slab_layout(Cin, Cout)
    slab = _pack_params(params, layout, n_rows, n_cols, bias_col)

    conv_dims = ([(1, 1, Cin, Cout)] * 3
                 + [(KH, KW, Cout, Cout) for _, KH, KW, _ in _BRANCH_CONVS]
                 + [(3, 3, 2 * Cout, Cout)])
    flops = 2 * N * HW * sum(kh * kw * ci * co for kh, kw, ci, co in conv_dims)
    bytes_accessed = 4 * (x_p.size + slab.size + num_blocks * Cout * Ltot)

    out = pl.pallas_call(
        _make_rfb_kernel(W, HW, P, M, Ltot, nb, Cin, Cout, layout, bias_col),
        out_shape=jax.ShapeDtypeStruct((num_blocks, Cout, Ltot), x_nchw.dtype),
        grid=(num_blocks,),
        in_specs=[pl.BlockSpec((1, Cin, Ltot), lambda b: (b, 0, 0)),
                  pl.BlockSpec((n_rows, n_cols), lambda b: (0, 0))],
        out_specs=pl.BlockSpec((1, Cout, Ltot), lambda b: (b, 0, 0)),
        compiler_params=pltpu.CompilerParams(dimension_semantics=("parallel",)),
        cost_estimate=pl.CostEstimate(flops=flops, transcendentals=0,
                                      bytes_accessed=int(bytes_accessed)),
    )(x_p, slab)

    # Unpack lanes -> NCHW (drop the per-image zero margins).
    out = out.reshape(num_blocks, Cout, nb, P).transpose(0, 2, 1, 3)
    return out.reshape(N, Cout, P)[:, :, :HW].reshape(N, Cout, H, W)


# ----------------------------------------------------------------------------
# Parameter construction (matches the PyTorch __init__: weight ~ N(0, 0.01^2),
# bias = 0).  Weights stored in HWIO.
# ----------------------------------------------------------------------------
def _conv_param(key, KH, KW, Cin, Cout):
    w = jax.random.normal(key, (KH, KW, Cin, Cout), jnp.float32) * 0.01
    b = jnp.zeros((Cout,), jnp.float32)
    return w, b


def init_rfb_pruned_params(key, in_channel, out_channel):
    ks = jax.random.split(key, 10)
    p = {}
    p["b2_0"] = _conv_param(ks[0], 1, 1, in_channel, out_channel)
    p["b2_1"] = _conv_param(ks[1], 1, 5, out_channel, out_channel)
    p["b2_2"] = _conv_param(ks[2], 5, 1, out_channel, out_channel)
    p["b2_3"] = _conv_param(ks[3], 3, 3, out_channel, out_channel)
    p["b3_0"] = _conv_param(ks[4], 1, 1, in_channel, out_channel)
    p["b3_1"] = _conv_param(ks[5], 1, 7, out_channel, out_channel)
    p["b3_2"] = _conv_param(ks[6], 7, 1, out_channel, out_channel)
    p["b3_3"] = _conv_param(ks[7], 3, 3, out_channel, out_channel)
    p["cat"] = _conv_param(ks[8], 3, 3, 2 * out_channel, out_channel)
    p["res"] = _conv_param(ks[9], 1, 1, in_channel, out_channel)
    return p


# ----------------------------------------------------------------------------
# Pure-JAX reference (lax.conv) used as a numerical cross-check.
# ----------------------------------------------------------------------------
def _conv_ref(x, w, b, padding, dilation=1):
    y = jax.lax.conv_general_dilated(
        x, w, window_strides=(1, 1),
        padding=[(padding[0], padding[0]), (padding[1], padding[1])],
        rhs_dilation=(dilation, dilation),
        dimension_numbers=("NHWC", "HWIO", "NHWC"))
    return y + b.reshape(1, 1, 1, -1)


def rfb_pruned_reference(params, x_nchw):
    x = jnp.transpose(x_nchw, (0, 2, 3, 1))
    x2 = _conv_ref(x, *params["b2_0"], padding=(0, 0))
    x2 = _conv_ref(x2, *params["b2_1"], padding=(0, 2))
    x2 = _conv_ref(x2, *params["b2_2"], padding=(2, 0))
    x2 = _conv_ref(x2, *params["b2_3"], padding=(5, 5), dilation=5)
    x3 = _conv_ref(x, *params["b3_0"], padding=(0, 0))
    x3 = _conv_ref(x3, *params["b3_1"], padding=(0, 3))
    x3 = _conv_ref(x3, *params["b3_2"], padding=(3, 0))
    x3 = _conv_ref(x3, *params["b3_3"], padding=(7, 7), dilation=7)
    x_cat = _conv_ref(jnp.concatenate([x2, x3], axis=-1), *params["cat"], padding=(1, 1))
    out = jnp.maximum(x_cat + _conv_ref(x, *params["res"], padding=(0, 0)), 0.0)
    return jnp.transpose(out, (0, 3, 1, 2))


def _rel_err(a, b):
    return float(jnp.linalg.norm(a - b) / (jnp.linalg.norm(b) + 1e-12))


if __name__ == "__main__":
    key = jax.random.PRNGKey(0)
    k_param, k_x = jax.random.split(key)

    in_channel, out_channel = 4, 4
    N, H, W = 2, 16, 16

    params = init_rfb_pruned_params(k_param, in_channel, out_channel)
    x = jax.random.normal(k_x, (N, in_channel, H, W), jnp.float32)  # NCHW, like PyTorch

    out = jax.block_until_ready(rfb_pruned_forward(params, x))
    assert out.shape == (N, out_channel, H, W), out.shape

    # Check vs lax.conv reference.  Tolerance is norm-relative and slightly
    # loose because the kernel contracts channels on the MXU in bf16 (f32
    # accumulation); structural bugs give O(1) relative error.
    ref = jax.block_until_ready(rfb_pruned_reference(params, x))
    assert _rel_err(out, ref) < 5e-2, "mismatch vs lax.conv reference (init params)"

    # Stronger check with larger-magnitude weights / nonzero biases so both
    # branches and every bias add contribute meaningfully to the output.
    stress = jax.tree_util.tree_map(
        lambda a: a * 25.0 if a.ndim == 4 else a + 0.05, params)
    out_s = jax.block_until_ready(rfb_pruned_forward(stress, x))
    ref_s = jax.block_until_ready(rfb_pruned_reference(stress, x))
    assert _rel_err(out_s, ref_s) < 5e-2, "mismatch vs lax.conv reference (stress params)"

    print("KERNEL_OK")
</pallas_src>

<mosaic_0001>
module attributes {stable_mosaic.version = 11 : i64} {
  func.func @kernel(%arg0: i32, %arg1: memref<1x4x384xf32, #tpu.memory_space<vmem>>, %arg2: memref<72x73xf32, #tpu.memory_space<vmem>>, %arg3: memref<1x4x384xf32, #tpu.memory_space<vmem>>) attributes {dimension_semantics = [#tpu.dimension_semantics<parallel>], iteration_bounds = array<i64: 2>, scalar_prefetch = 0 : i64, scratch_operands = 0 : i64, tpu.core_type = #tpu.core_type<tc>, window_params = [{transform_indices = @transform_0, window_bounds = array<i64: 1, 4, 384>}, {pipeline_mode = #tpu.pipeline_mode<synchronous>, transform_indices = @transform_1, window_bounds = array<i64: 72, 73>}, {transform_indices = @transform_2, window_bounds = array<i64: 1, 4, 384>}]} {
    %c0 = arith.constant 0 : index
    %c0_0 = arith.constant 0 : index
    %c0_1 = arith.constant 0 : index
    %0 = vector.load %arg1[%c0, %c0_0, %c0_1] : memref<1x4x384xf32, #tpu.memory_space<vmem>>, vector<1x4x384xf32>
    %1 = vector.shape_cast %0 : vector<1x4x384xf32> to vector<4x384xf32>
    %2 = tpu.iota {dimensions = array<i32: 1>} : vector<1x384xi32>
    %c16_i32 = arith.constant 16 : i32
    %c0_i32 = arith.constant 0 : i32
    %3 = arith.cmpi eq, %c16_i32, %c0_i32 : i32
    %c1_i32 = arith.constant 1 : i32
    %4 = arith.select %3, %c1_i32, %c16_i32 : i32
    %5 = vector.broadcast %4 : i32 to vector<1x384xi32>
    %6 = arith.remsi %2, %5 : vector<1x384xi32>
    %c0_i32_2 = arith.constant 0 : i32
    %7 = vector.broadcast %c0_i32_2 : i32 to vector<1x384xi32>
    %8 = arith.cmpi ne, %6, %7 : vector<1x384xi32>
    %c0_i32_3 = arith.constant 0 : i32
    %9 = vector.broadcast %c0_i32_3 : i32 to vector<1x384xi32>
    %10 = arith.cmpi slt, %6, %9 : vector<1x384xi32>
    %c0_i32_4 = arith.constant 0 : i32
    %11 = arith.cmpi slt, %4, %c0_i32_4 : i32
    %12 = vector.broadcast %11 : i1 to vector<1x384xi1>
    %13 = vector.broadcast %12 : vector<1x384xi1> to vector<1x384xi1>
    %14 = arith.xori %10, %13 : vector<1x384xi1>
    %15 = arith.andi %14, %8 : vector<1x384xi1>
    %16 = vector.broadcast %4 : i32 to vector<1x384xi32>
    %17 = arith.addi %6, %16 : vector<1x384xi32>
    %18 = arith.select %15, %17, %6 : vector<1x384xi1>, vector<1x384xi32>
    %c256_i32 = arith.constant 256 : i32
    %19 = vector.broadcast %c256_i32 : i32 to vector<1x384xi32>
    %20 = arith.cmpi slt, %2, %19 : vector<1x384xi32>
    %21 = vector.shape_cast %20 : vector<1x384xi1> to vector<1x384xi1>
    %22 = vector.broadcast %21 : vector<1x384xi1> to vector<4x384xi1>
    %c0_5 = arith.constant 0 : index
    %c0_6 = arith.constant 0 : index
    %23 = vector.load %arg2[%c0_5, %c0_6] : memref<72x73xf32, #tpu.memory_space<vmem>>, vector<12x4xf32>
    %24 = arith.truncf %23 : vector<12x4xf32> to vector<12x4xbf16>
    %c0_7 = arith.constant 0 : index
    %c72 = arith.constant 72 : index
    %25 = vector.load %arg2[%c0_7, %c72] : memref<72x73xf32, #tpu.memory_space<vmem>>, vector<12x1xf32>
    %26 = arith.truncf %1 : vector<4x384xf32> to vector<4x384xbf16>
    %cst = arith.constant dense<0.000000e+00> : vector<12x384xf32>
    %27 = tpu.matmul %24, %26, %cst {dimension_numbers = #tpu.dot_dimension_numbers<[1], [0], [0], [1], [0, 0, 1, 1], [], []>} : vector<12x4xbf16>, vector<4x384xbf16>, vector<12x384xf32> -> vector<12x384xf32>
    %28 = vector.broadcast %25 : vector<12x1xf32> to vector<12x384xf32>
    %29 = arith.addf %27, %28 : vector<12x384xf32>
    %30 = vector.extract_strided_slice %29 {offsets = [0, 0], sizes = [4, 384], strides = [1, 1]} : vector<12x384xf32> to vector<4x384xf32>
    %31 = vector.extract_strided_slice %29 {offsets = [4, 0], sizes = [4, 384], strides = [1, 1]} : vector<12x384xf32> to vector<4x384xf32>
    %32 = vector.extract_strided_slice %29 {offsets = [8, 0], sizes = [4, 384], strides = [1, 1]} : vector<12x384xf32> to vector<4x384xf32>
    %c16 = arith.constant 16 : index
    %c0_8 = arith.constant 0 : index
    %33 = vector.load %arg2[%c16, %c0_8] : memref<72x73xf32, #tpu.memory_space<vmem>>, vector<4x20xf32>
    %34 = arith.truncf %33 : vector<4x20xf32> to vector<4x20xbf16>
    %c16_9 = arith.constant 16 : index
    %c72_10 = arith.constant 72 : index
    %35 = vector.load %arg2[%c16_9, %c72_10] : memref<72x73xf32, #tpu.memory_space<vmem>>, vector<4x1xf32>
    %cst_11 = arith.constant 0.000000e+00 : f32
    %36 = vector.broadcast %cst_11 : f32 to vector<4x128xf32>
    %37 = tpu.concatenate %36, %30, %36 in 1 : vector<4x128xf32>, vector<4x384xf32>, vector<4x128xf32> -> vector<4x640xf32>
    %38 = vector.extract_strided_slice %37 {offsets = [0, 126], sizes = [4, 384], strides = [1, 1]} : vector<4x640xf32> to vector<4x384xf32>
    %c-2_i32 = arith.constant -2 : i32
    %39 = vector.broadcast %c-2_i32 : i32 to vector<1x384xi32>
    %40 = arith.addi %18, %39 : vector<1x384xi32>
    %c0_i32_12 = arith.constant 0 : i32
    %41 = vector.broadcast %c0_i32_12 : i32 to vector<1x384xi32>
    %42 = arith.cmpi sge, %40, %41 : vector<1x384xi32>
    %c-2_i32_13 = arith.constant -2 : i32
    %43 = vector.broadcast %c-2_i32_13 : i32 to vector<1x384xi32>
    %44 = arith.addi %18, %43 : vector<1x384xi32>
    %c16_i32_14 = arith.constant 16 : i32
    %45 = vector.broadcast %c16_i32_14 : i32 to vector<1x384xi32>
    %46 = arith.cmpi slt, %44, %45 : vector<1x384xi32>
    %47 = arith.andi %42, %46 : vector<1x384xi1>
    %48 = vector.shape_cast %47 : vector<1x384xi1> to vector<1x384xi1>
    %49 = vector.broadcast %48 : vector<1x384xi1> to vector<4x384xi1>
    %cst_15 = arith.constant 0.000000e+00 : f32
    %50 = vector.broadcast %cst_15 : f32 to vector<4x384xf32>
    %51 = arith.select %49, %38, %50 : vector<4x384xi1>, vector<4x384xf32>
    %52 = vector.extract_strided_slice %37 {offsets = [0, 127], sizes = [4, 384], strides = [1, 1]} : vector<4x640xf32> to vector<4x384xf32>
    %c-1_i32 = arith.constant -1 : i32
    %53 = vector.broadcast %c-1_i32 : i32 to vector<1x384xi32>
    %54 = arith.addi %18, %53 : vector<1x384xi32>
    %c0_i32_16 = arith.constant 0 : i32
    %55 = vector.broadcast %c0_i32_16 : i32 to vector<1x384xi32>
    %56 = arith.cmpi sge, %54, %55 : vector<1x384xi32>
    %c-1_i32_17 = arith.constant -1 : i32
    %57 = vector.broadcast %c-1_i32_17 : i32 to vector<1x384xi32>
    %58 = arith.addi %18, %57 : vector<1x384xi32>
    %c16_i32_18 = arith.constant 16 : i32
    %59 = vector.broadcast %c16_i32_18 : i32 to vector<1x384xi32>
    %60 = arith.cmpi slt, %58, %59 : vector<1x384xi32>
    %61 = arith.andi %56, %60 : vector<1x384xi1>
    %62 = vector.shape_cast %61 : vector<1x384xi1> to vector<1x384xi1>
    %63 = vector.broadcast %62 : vector<1x384xi1> to vector<4x384xi1>
    %cst_19 = arith.constant 0.000000e+00 : f32
    %64 = vector.broadcast %cst_19 : f32 to vector<4x384xf32>
    %65 = arith.select %63, %52, %64 : vector<4x384xi1>, vector<4x384xf32>
    %66 = vector.extract_strided_slice %37 {offsets = [0, 129], sizes = [4, 384], strides = [1, 1]} : vector<4x640xf32> to vector<4x384xf32>
    %c1_i32_20 = arith.constant 1 : i32
    %67 = vector.broadcast %c1_i32_20 : i32 to vector<1x384xi32>
    %68 = arith.addi %18, %67 : vector<1x384xi32>
    %c0_i32_21 = arith.constant 0 : i32
    %69 = vector.broadcast %c0_i32_21 : i32 to vector<1x384xi32>
    %70 = arith.cmpi sge, %68, %69 : vector<1x384xi32>
    %c1_i32_22 = arith.constant 1 : i32
    %71 = vector.broadcast %c1_i32_22 : i32 to vector<1x384xi32>
    %72 = arith.addi %18, %71 : vector<1x384xi32>
    %c16_i32_23 = arith.constant 16 : i32
    %73 = vector.broadcast %c16_i32_23 : i32 to vector<1x384xi32>
    %74 = arith.cmpi slt, %72, %73 : vector<1x384xi32>
    %75 = arith.andi %70, %74 : vector<1x384xi1>
    %76 = vector.shape_cast %75 : vector<1x384xi1> to vector<1x384xi1>
    %77 = vector.broadcast %76 : vector<1x384xi1> to vector<4x384xi1>
    %cst_24 = arith.constant 0.000000e+00 : f32
    %78 = vector.broadcast %cst_24 : f32 to vector<4x384xf32>
    %79 = arith.select %77, %66, %78 : vector<4x384xi1>, vector<4x384xf32>
    %80 = vector.extract_strided_slice %37 {offsets = [0, 130], sizes = [4, 384], strides = [1, 1]} : vector<4x640xf32> to vector<4x384xf32>
    %c2_i32 = arith.constant 2 : i32
    %81 = vector.broadcast %c2_i32 : i32 to vector<1x384xi32>
    %82 = arith.addi %18, %81 : vector<1x384xi32>
    %c0_i32_25 = arith.constant 0 : i32
    %83 = vector.broadcast %c0_i32_25 : i32 to vector<1x384xi32>
    %84 = arith.cmpi sge, %82, %83 : vector<1x384xi32>
    %c2_i32_26 = arith.constant 2 : i32
    %85 = vector.broadcast %c2_i32_26 : i32 to vector<1x384xi32>
    %86 = arith.addi %18, %85 : vector<1x384xi32>
    %c16_i32_27 = arith.constant 16 : i32
    %87 = vector.broadcast %c16_i32_27 : i32 to vector<1x384xi32>
    %88 = arith.cmpi slt, %86, %87 : vector<1x384xi32>
    %89 = arith.andi %84, %88 : vector<1x384xi1>
    %90 = vector.shape_cast %89 : vector<1x384xi1> to vector<1x384xi1>
    %91 = vector.broadcast %90 : vector<1x384xi1> to vector<4x384xi1>
    %cst_28 = arith.constant 0.000000e+00 : f32
    %92 = vector.broadcast %cst_28 : f32 to vector<4x384xf32>
    %93 = arith.select %91, %80, %92 : vector<4x384xi1>, vector<4x384xf32>
    %94 = tpu.concatenate %51, %65, %30, %79, %93 in 0 : vector<4x384xf32>, vector<4x384xf32>, vector<4x384xf32>, vector<4x384xf32>, vector<4x384xf32> -> vector<20x384xf32>
    %95 = arith.truncf %94 : vector<20x384xf32> to vector<20x384xbf16>
    %cst_29 = arith.constant dense<0.000000e+00> : vector<4x384xf32>
    %96 = tpu.matmul %34, %95, %cst_29 {dimension_numbers = #tpu.dot_dimension_numbers<[1], [0], [0], [1], [0, 0, 1, 1], [], []>} : vector<4x20xbf16>, vector<20x384xbf16>, vector<4x384xf32> -> vector<4x384xf32>
    %97 = vector.broadcast %35 : vector<4x1xf32> to vector<4x384xf32>
    %98 = arith.addf %96, %97 : vector<4x384xf32>
    %cst_30 = arith.constant 0.000000e+00 : f32
    %99 = vector.broadcast %cst_30 : f32 to vector<4x384xf32>
    %100 = arith.select %22, %98, %99 : vector<4x384xi1>, vector<4x384xf32>
    %c24 = arith.constant 24 : index
    %c0_31 = arith.constant 0 : index
    %101 = vector.load %arg2[%c24, %c0_31] : memref<72x73xf32, #tpu.memory_space<vmem>>, vector<4x20xf32>
    %102 = arith.truncf %101 : vector<4x20xf32> to vector<4x20xbf16>
    %c24_32 = arith.constant 24 : index
    %c72_33 = arith.constant 72 : index
    %103 = vector.load %arg2[%c24_32, %c72_33] : memref<72x73xf32, #tpu.memory_space<vmem>>, vector<4x1xf32>
    %cst_34 = arith.constant 0.000000e+00 : f32
    %104 = vector.broadcast %cst_34 : f32 to vector<4x128xf32>
    %105 = tpu.concatenate %104, %100, %104 in 1 : vector<4x128xf32>, vector<4x384xf32>, vector<4x128xf32> -> vector<4x640xf32>
    %106 = vector.extract_strided_slice %105 {offsets = [0, 96], sizes = [4, 384], strides = [1, 1]} : vector<4x640xf32> to vector<4x384xf32>
    %107 = vector.extract_strided_slice %105 {offsets = [0, 112], sizes = [4, 384], strides = [1, 1]} : vector<4x640xf32> to vector<4x384xf32>
    %108 = vector.extract_strided_slice %105 {offsets = [0, 144], sizes = [4, 384], strides = [1, 1]} : vector<4x640xf32> to vector<4x384xf32>
    %109 = vector.extract_strided_slice %105 {offsets = [0, 160], sizes = [4, 384], strides = [1, 1]} : vector<4x640xf32> to vector<4x384xf32>
    %110 = tpu.concatenate %106, %107, %100, %108, %109 in 0 : vector<4x384xf32>, vector<4x384xf32>, vector<4x384xf32>, vector<4x384xf32>, vector<4x384xf32> -> vector<20x384xf32>
    %111 = arith.truncf %110 : vector<20x384xf32> to vector<20x384xbf16>
    %cst_35 = arith.constant dense<0.000000e+00> : vector<4x384xf32>
    %112 = tpu.matmul %102, %111, %cst_35 {dimension_numbers = #tpu.dot_dimension_numbers<[1], [0], [0], [1], [0, 0, 1, 1], [], []>} : vector<4x20xbf16>, vector<20x384xbf16>, vector<4x384xf32> -> vector<4x384xf32>
    %113 = vector.broadcast %103 : vector<4x1xf32> to vector<4x384xf32>
    %114 = arith.addf %112, %113 : vector<4x384xf32>
    %cst_36 = arith.constant 0.000000e+00 : f32
    %115 = vector.broadcast %cst_36 : f32 to vector<4x384xf32>
    %116 = arith.select %22, %114, %115 : vector<4x384xi1>, vector<4x384xf32>
    %c32 = arith.constant 32 : index
    %c0_37 = arith.constant 0 : index
    %117 = vector.load %arg2[%c32, %c0_37] : memref<72x73xf32, #tpu.memory_space<vmem>>, vector<4x36xf32>
    %118 = arith.truncf %117 : vector<4x36xf32> to vector<4x36xbf16>
    %c32_38 = arith.constant 32 : index
    %c72_39 = arith.constant 72 : index
    %119 = vector.load %arg2[%c32_38, %c72_39] : memref<72x73xf32, #tpu.memory_space<vmem>>, vector<4x1xf32>
    %cst_40 = arith.constant 0.000000e+00 : f32
    %120 = vector.broadcast %cst_40 : f32 to vector<4x128xf32>
    %121 = tpu.concatenate %120, %116, %120 in 1 : vector<4x128xf32>, vector<4x384xf32>, vector<4x128xf32> -> vector<4x640xf32>
    %122 = vector.extract_strided_slice %121 {offsets = [0, 43], sizes = [4, 384], strides = [1, 1]} : vector<4x640xf32> to vector<4x384xf32>
    %c-5_i32 = arith.constant -5 : i32
    %123 = vector.broadcast %c-5_i32 : i32 to vector<1x384xi32>
    %124 = arith.addi %18, %123 : vector<1x384xi32>
    %c0_i32_41 = arith.constant 0 : i32
    %125 = vector.broadcast %c0_i32_41 : i32 to vector<1x384xi32>
    %126 = arith.cmpi sge, %124, %125 : vector<1x384xi32>
    %c-5_i32_42 = arith.constant -5 : i32
    %127 = vector.broadcast %c-5_i32_42 : i32 to vector<1x384xi32>
    %128 = arith.addi %18, %127 : vector<1x384xi32>
    %c16_i32_43 = arith.constant 16 : i32
    %129 = vector.broadcast %c16_i32_43 : i32 to vector<1x384xi32>
    %130 = arith.cmpi slt, %128, %129 : vector<1x384xi32>
    %131 = arith.andi %126, %130 : vector<1x384xi1>
    %132 = vector.shape_cast %131 : vector<1x384xi1> to vector<1x384xi1>
    %133 = vector.broadcast %132 : vector<1x384xi1> to vector<4x384xi1>
    %cst_44 = arith.constant 0.000000e+00 : f32
    %134 = vector.broadcast %cst_44 : f32 to vector<4x384xf32>
    %135 = arith.select %133, %122, %134 : vector<4x384xi1>, vector<4x384xf32>
    %136 = vector.extract_strided_slice %121 {offsets = [0, 48], sizes = [4, 384], strides = [1, 1]} : vector<4x640xf32> to vector<4x384xf32>
    %137 = vector.extract_strided_slice %121 {offsets = [0, 53], sizes = [4, 384], strides = [1, 1]} : vector<4x640xf32> to vector<4x384xf32>
    %c5_i32 = arith.constant 5 : i32
    %138 = vector.broadcast %c5_i32 : i32 to vector<1x384xi32>
    %139 = arith.addi %18, %138 : vector<1x384xi32>
    %c0_i32_45 = arith.constant 0 : i32
    %140 = vector.broadcast %c0_i32_45 : i32 to vector<1x384xi32>
    %141 = arith.cmpi sge, %139, %140 : vector<1x384xi32>
    %c5_i32_46 = arith.constant 5 : i32
    %142 = vector.broadcast %c5_i32_46 : i32 to vector<1x384xi32>
    %143 = arith.addi %18, %142 : vector<1x384xi32>
    %c16_i32_47 = arith.constant 16 : i32
    %144 = vector.broadcast %c16_i32_47 : i32 to vector<1x384xi32>
    %145 = arith.cmpi slt, %143, %144 : vector<1x384xi32>
    %146 = arith.andi %141, %145 : vector<1x384xi1>
    %147 = vector.shape_cast %146 : vector<1x384xi1> to vector<1x384xi1>
    %148 = vector.broadcast %147 : vector<1x384xi1> to vector<4x384xi1>
    %cst_48 = arith.constant 0.000000e+00 : f32
    %149 = vector.broadcast %cst_48 : f32 to vector<4x384xf32>
    %150 = arith.select %148, %137, %149 : vector<4x384xi1>, vector<4x384xf32>
    %151 = vector.extract_strided_slice %121 {offsets = [0, 123], sizes = [4, 384], strides = [1, 1]} : vector<4x640xf32> to vector<4x384xf32>
    %cst_49 = arith.constant 0.000000e+00 : f32
    %152 = vector.broadcast %cst_49 : f32 to vector<4x384xf32>
    %153 = arith.select %133, %151, %152 : vector<4x384xi1>, vector<4x384xf32>
    %154 = vector.extract_strided_slice %121 {offsets = [0, 133], sizes = [4, 384], strides = [1, 1]} : vector<4x640xf32> to vector<4x384xf32>
    %cst_50 = arith.constant 0.000000e+00 : f32
    %155 = vector.broadcast %cst_50 : f32 to vector<4x384xf32>
    %156 = arith.select %148, %154, %155 : vector<4x384xi1>, vector<4x384xf32>
    %157 = vector.extract_strided_slice %121 {offsets = [0, 203], sizes = [4, 384], strides = [1, 1]} : vector<4x640xf32> to vector<4x384xf32>
    %cst_51 = arith.constant 0.000000e+00 : f32
    %158 = vector.broadcast %cst_51 : f32 to vector<4x384xf32>
    %159 = arith.select %133, %157, %158 : vector<4x384xi1>, vector<4x384xf32>
    %160 = vector.extract_strided_slice %121 {offsets = [0, 208], sizes = [4, 384], strides = [1, 1]} : vector<4x640xf32> to vector<4x384xf32>
    %161 = vector.extract_strided_slice %121 {offsets = [0, 213], sizes = [4, 384], strides = [1, 1]} : vector<4x640xf32> to vector<4x384xf32>
    %cst_52 = arith.constant 0.000000e+00 : f32
    %162 = vector.broadcast %cst_52 : f32 to vector<4x384xf32>
    %163 = arith.select %148, %161, %162 : vector<4x384xi1>, vector<4x384xf32>
    %164 = tpu.concatenate %135, %136, %150, %153, %116, %156, %159, %160, %163 in 0 : vector<4x384xf32>, vector<4x384xf32>, vector<4x384xf32>, vector<4x384xf32>, vector<4x384xf32>, vector<4x384xf32>, vector<4x384xf32>, vector<4x384xf32>, vector<4x384xf32> -> vector<36x384xf32>
    %165 = arith.truncf %164 : vector<36x384xf32> to vector<36x384xbf16>
    %cst_53 = arith.constant dense<0.000000e+00> : vector<4x384xf32>
    %166 = tpu.matmul %118, %165, %cst_53 {dimension_numbers = #tpu.dot_dimension_numbers<[1], [0], [0], [1], [0, 0, 1, 1], [], []>} : vector<4x36xbf16>, vector<36x384xbf16>, vector<4x384xf32> -> vector<4x384xf32>
    %167 = vector.broadcast %119 : vector<4x1xf32> to vector<4x384xf32>
    %168 = arith.addf %166, %167 : vector<4x384xf32>
    %cst_54 = arith.constant 0.000000e+00 : f32
    %169 = vector.broadcast %cst_54 : f32 to vector<4x384xf32>
    %170 = arith.select %22, %168, %169 : vector<4x384xi1>, vector<4x384xf32>
    %c40 = arith.constant 40 : index
    %c0_55 = arith.constant 0 : index
    %171 = vector.load %arg2[%c40, %c0_55] : memref<72x73xf32, #tpu.memory_space<vmem>>, vector<4x28xf32>
    %172 = arith.truncf %171 : vector<4x28xf32> to vector<4x28xbf16>
    %c40_56 = arith.constant 40 : index
    %c72_57 = arith.constant 72 : index
    %173 = vector.load %arg2[%c40_56, %c72_57] : memref<72x73xf32, #tpu.memory_space<vmem>>, vector<4x1xf32>
    %cst_58 = arith.constant 0.000000e+00 : f32
    %174 = vector.broadcast %cst_58 : f32 to vector<4x128xf32>
    %175 = tpu.concatenate %174, %31, %174 in 1 : vector<4x128xf32>, vector<4x384xf32>, vector<4x128xf32> -> vector<4x640xf32>
    %176 = vector.extract_strided_slice %175 {offsets = [0, 125], sizes = [4, 384], strides = [1, 1]} : vector<4x640xf32> to vector<4x384xf32>
    %c-3_i32 = arith.constant -3 : i32
    %177 = vector.broadcast %c-3_i32 : i32 to vector<1x384xi32>
    %178 = arith.addi %18, %177 : vector<1x384xi32>
    %c0_i32_59 = arith.constant 0 : i32
    %179 = vector.broadcast %c0_i32_59 : i32 to vector<1x384xi32>
    %180 = arith.cmpi sge, %178, %179 : vector<1x384xi32>
    %c-3_i32_60 = arith.constant -3 : i32
    %181 = vector.broadcast %c-3_i32_60 : i32 to vector<1x384xi32>
    %182 = arith.addi %18, %181 : vector<1x384xi32>
    %c16_i32_61 = arith.constant 16 : i32
    %183 = vector.broadcast %c16_i32_61 : i32 to vector<1x384xi32>
    %184 = arith.cmpi slt, %182, %183 : vector<1x384xi32>
    %185 = arith.andi %180, %184 : vector<1x384xi1>
    %186 = vector.shape_cast %185 : vector<1x384xi1> to vector<1x384xi1>
    %187 = vector.broadcast %186 : vector<1x384xi1> to vector<4x384xi1>
    %cst_62 = arith.constant 0.000000e+00 : f32
    %188 = vector.broadcast %cst_62 : f32 to vector<4x384xf32>
    %189 = arith.select %187, %176, %188 : vector<4x384xi1>, vector<4x384xf32>
    %190 = vector.extract_strided_slice %175 {offsets = [0, 126], sizes = [4, 384], strides = [1, 1]} : vector<4x640xf32> to vector<4x384xf32>
    %cst_63 = arith.constant 0.000000e+00 : f32
    %191 = vector.broadcast %cst_63 : f32 to vector<4x384xf32>
    %192 = arith.select %49, %190, %191 : vector<4x384xi1>, vector<4x384xf32>
    %193 = vector.extract_strided_slice %175 {offsets = [0, 127], sizes = [4, 384], strides = [1, 1]} : vector<4x640xf32> to vector<4x384xf32>
    %cst_64 = arith.constant 0.000000e+00 : f32
    %194 = vector.broadcast %cst_64 : f32 to vector<4x384xf32>
    %195 = arith.select %63, %193, %194 : vector<4x384xi1>, vector<4x384xf32>
    %196 = vector.extract_strided_slice %175 {offsets = [0, 129], sizes = [4, 384], strides = [1, 1]} : vector<4x640xf32> to vector<4x384xf32>
    %cst_65 = arith.constant 0.000000e+00 : f32
    %197 = vector.broadcast %cst_65 : f32 to vector<4x384xf32>
    %198 = arith.select %77, %196, %197 : vector<4x384xi1>, vector<4x384xf32>
    %199 = vector.extract_strided_slice %175 {offsets = [0, 130], sizes = [4, 384], strides = [1, 1]} : vector<4x640xf32> to vector<4x384xf32>
    %cst_66 = arith.constant 0.000000e+00 : f32
    %200 = vector.broadcast %cst_66 : f32 to vector<4x384xf32>
    %201 = arith.select %91, %199, %200 : vector<4x384xi1>, vector<4x384xf32>
    %202 = vector.extract_strided_slice %175 {offsets = [0, 131], sizes = [4, 384], strides = [1, 1]} : vector<4x640xf32> to vector<4x384xf32>
    %c3_i32 = arith.constant 3 : i32
    %203 = vector.broadcast %c3_i32 : i32 to vector<1x384xi32>
    %204 = arith.addi %18, %203 : vector<1x384xi32>
    %c0_i32_67 = arith.constant 0 : i32
    %205 = vector.broadcast %c0_i32_67 : i32 to vector<1x384xi32>
    %206 = arith.cmpi sge, %204, %205 : vector<1x384xi32>
    %c3_i32_68 = arith.constant 3 : i32
    %207 = vector.broadcast %c3_i32_68 : i32 to vector<1x384xi32>
    %208 = arith.addi %18, %207 : vector<1x384xi32>
    %c16_i32_69 = arith.constant 16 : i32
    %209 = vector.broadcast %c16_i32_69 : i32 to vector<1x384xi32>
    %210 = arith.cmpi slt, %208, %209 : vector<1x384xi32>
    %211 = arith.andi %206, %210 : vector<1x384xi1>
    %212 = vector.shape_cast %211 : vector<1x384xi1> to vector<1x384xi1>
    %213 = vector.broadcast %212 : vector<1x384xi1> to vector<4x384xi1>
    %cst_70 = arith.constant 0.000000e+00 : f32
    %214 = vector.broadcast %cst_70 : f32 to vector<4x384xf32>
    %215 = arith.select %213, %202, %214 : vector<4x384xi1>, vector<4x384xf32>
    %216 = tpu.concatenate %189, %192, %195, %31, %198, %201, %215 in 0 : vector<4x384xf32>, vector<4x384xf32>, vector<4x384xf32>, vector<4x384xf32>, vector<4x384xf32>, vector<4x384xf32>, vector<4x384xf32> -> vector<28x384xf32>
    %217 = arith.truncf %216 : vector<28x384xf32> to vector<28x384xbf16>
    %cst_71 = arith.constant dense<0.000000e+00> : vector<4x384xf32>
    %218 = tpu.matmul %172, %217, %cst_71 {dimension_numbers = #tpu.dot_dimension_numbers<[1], [0], [0], [1], [0, 0, 1, 1], [], []>} : vector<4x28xbf16>, vector<28x384xbf16>, vector<4x384xf32> -> vector<4x384xf32>
    %219 = vector.broadcast %173 : vector<4x1xf32> to vector<4x384xf32>
    %220 = arith.addf %218, %219 : vector<4x384xf32>
    %cst_72 = arith.constant 0.000000e+00 : f32
    %221 = vector.broadcast %cst_72 : f32 to vector<4x384xf32>
    %222 = arith.select %22, %220, %221 : vector<4x384xi1>, vector<4x384xf32>
    %c48 = arith.constant 48 : index
    %c0_73 = arith.constant 0 : index
    %223 = vector.load %arg2[%c48, %c0_73] : memref<72x73xf32, #tpu.memory_space<vmem>>, vector<4x28xf32>
    %224 = arith.truncf %223 : vector<4x28xf32> to vector<4x28xbf16>
    %c48_74 = arith.constant 48 : index
    %c72_75 = arith.constant 72 : index
    %225 = vector.load %arg2[%c48_74, %c72_75] : memref<72x73xf32, #tpu.memory_space<vmem>>, vector<4x1xf32>
    %cst_76 = arith.constant 0.000000e+00 : f32
    %226 = vector.broadcast %cst_76 : f32 to vector<4x128xf32>
    %227 = tpu.concatenate %226, %222, %226 in 1 : vector<4x128xf32>, vector<4x384xf32>, vector<4x128xf32> -> vector<4x640xf32>
    %228 = vector.extract_strided_slice %227 {offsets = [0, 80], sizes = [4, 384], strides = [1, 1]} : vector<4x640xf32> to vector<4x384xf32>
    %229 = vector.extract_strided_slice %227 {offsets = [0, 96], sizes = [4, 384], strides = [1, 1]} : vector<4x640xf32> to vector<4x384xf32>
    %230 = vector.extract_strided_slice %227 {offsets = [0, 112], sizes = [4, 384], strides = [1, 1]} : vector<4x640xf32> to vector<4x384xf32>
    %231 = vector.extract_strided_slice %227 {offsets = [0, 144], sizes = [4, 384], strides = [1, 1]} : vector<4x640xf32> to vector<4x384xf32>
    %232 = vector.extract_strided_slice %227 {offsets = [0, 160], sizes = [4, 384], strides = [1, 1]} : vector<4x640xf32> to vector<4x384xf32>
    %233 = vector.extract_strided_slice %227 {offsets = [0, 176], sizes = [4, 384], strides = [1, 1]} : vector<4x640xf32> to vector<4x384xf32>
    %234 = tpu.concatenate %228, %229, %230, %222, %231, %232, %233 in 0 : vector<4x384xf32>, vector<4x384xf32>, vector<4x384xf32>, vector<4x384xf32>, vector<4x384xf32>, vector<4x384xf32>, vector<4x384xf32> -> vector<28x384xf32>
    %235 = arith.truncf %234 : vector<28x384xf32> to vector<28x384xbf16>
    %cst_77 = arith.constant dense<0.000000e+00> : vector<4x384xf32>
    %236 = tpu.matmul %224, %235, %cst_77 {dimension_numbers = #tpu.dot_dimension_numbers<[1], [0], [0], [1], [0, 0, 1, 1], [], []>} : vector<4x28xbf16>, vector<28x384xbf16>, vector<4x384xf32> -> vector<4x384xf32>
    %237 = vector.broadcast %225 : vector<4x1xf32> to vector<4x384xf32>
    %238 = arith.addf %236, %237 : vector<4x384xf32>
    %cst_78 = arith.constant 0.000000e+00 : f32
    %239 = vector.broadcast %cst_78 : f32 to vector<4x384xf32>
    %240 = arith.select %22, %238, %239 : vector<4x384xi1>, vector<4x384xf32>
    %c56 = arith.constant 56 : index
    %c0_79 = arith.constant 0 : index
    %241 = vector.load %arg2[%c56, %c0_79] : memref<72x73xf32, #tpu.memory_space<vmem>>, vector<4x36xf32>
    %242 = arith.truncf %241 : vector<4x36xf32> to vector<4x36xbf16>
    %c56_80 = arith.constant 56 : index
    %c72_81 = arith.constant 72 : index
    %243 = vector.load %arg2[%c56_80, %c72_81] : memref<72x73xf32, #tpu.memory_space<vmem>>, vector<4x1xf32>
    %cst_82 = arith.constant 0.000000e+00 : f32
    %244 = vector.broadcast %cst_82 : f32 to vector<4x128xf32>
    %245 = tpu.concatenate %244, %240, %244 in 1 : vector<4x128xf32>, vector<4x384xf32>, vector<4x128xf32> -> vector<4x640xf32>
    %246 = vector.extract_strided_slice %245 {offsets = [0, 9], sizes = [4, 384], strides = [1, 1]} : vector<4x640xf32> to vector<4x384xf32>
    %c-7_i32 = arith.constant -7 : i32
    %247 = vector.broadcast %c-7_i32 : i32 to vector<1x384xi32>
    %248 = arith.addi %18, %247 : vector<1x384xi32>
    %c0_i32_83 = arith.constant 0 : i32
    %249 = vector.broadcast %c0_i32_83 : i32 to vector<1x384xi32>
    %250 = arith.cmpi sge, %248, %249 : vector<1x384xi32>
    %c-7_i32_84 = arith.constant -7 : i32
    %251 = vector.broadcast %c-7_i32_84 : i32 to vector<1x384xi32>
    %252 = arith.addi %18, %251 : vector<1x384xi32>
    %c16_i32_85 = arith.constant 16 : i32
    %253 = vector.broadcast %c16_i32_85 : i32 to vector<1x384xi32>
    %254 = arith.cmpi slt, %252, %253 : vector<1x384xi32>
    %255 = arith.andi %250, %254 : vector<1x384xi1>
    %256 = vector.shape_cast %255 : vector<1x384xi1> to vector<1x384xi1>
    %257 = vector.broadcast %256 : vector<1x384xi1> to vector<4x384xi1>
    %cst_86 = arith.constant 0.000000e+00 : f32
    %258 = vector.broadcast %cst_86 : f32 to vector<4x384xf32>
    %259 = arith.select %257, %246, %258 : vector<4x384xi1>, vector<4x384xf32>
    %260 = vector.extract_strided_slice %245 {offsets = [0, 16], sizes = [4, 384], strides = [1, 1]} : vector<4x640xf32> to vector<4x384xf32>
    %261 = vector.extract_strided_slice %245 {offsets = [0, 23], sizes = [4, 384], strides = [1, 1]} : vector<4x640xf32> to vector<4x384xf32>
    %c7_i32 = arith.constant 7 : i32
    %262 = vector.broadcast %c7_i32 : i32 to vector<1x384xi32>
    %263 = arith.addi %18, %262 : vector<1x384xi32>
    %c0_i32_87 = arith.constant 0 : i32
    %264 = vector.broadcast %c0_i32_87 : i32 to vector<1x384xi32>
    %265 = arith.cmpi sge, %263, %264 : vector<1x384xi32>
    %c7_i32_88 = arith.constant 7 : i32
    %266 = vector.broadcast %c7_i32_88 : i32 to vector<1x384xi32>
    %267 = arith.addi %18, %266 : vector<1x384xi32>
    %c16_i32_89 = arith.constant 16 : i32
    %268 = vector.broadcast %c16_i32_89 : i32 to vector<1x384xi32>
    %269 = arith.cmpi slt, %267, %268 : vector<1x384xi32>
    %270 = arith.andi %265, %269 : vector<1x384xi1>
    %271 = vector.shape_cast %270 : vector<1x384xi1> to vector<1x384xi1>
    %272 = vector.broadcast %271 : vector<1x384xi1> to vector<4x384xi1>
    %cst_90 = arith.constant 0.000000e+00 : f32
    %273 = vector.broadcast %cst_90 : f32 to vector<4x384xf32>
    %274 = arith.select %272, %261, %273 : vector<4x384xi1>, vector<4x384xf32>
    %275 = vector.extract_strided_slice %245 {offsets = [0, 121], sizes = [4, 384], strides = [1, 1]} : vector<4x640xf32> to vector<4x384xf32>
    %cst_91 = arith.constant 0.000000e+00 : f32
    %276 = vector.broadcast %cst_91 : f32 to vector<4x384xf32>
    %277 = arith.select %257, %275, %276 : vector<4x384xi1>, vector<4x384xf32>
    %278 = vector.extract_strided_slice %245 {offsets = [0, 135], sizes = [4, 384], strides = [1, 1]} : vector<4x640xf32> to vector<4x384xf32>
    %cst_92 = arith.constant 0.000000e+00 : f32
    %279 = vector.broadcast %cst_92 : f32 to vector<4x384xf32>
    %280 = arith.select %272, %278, %279 : vector<4x384xi1>, vector<4x384xf32>
    %281 = vector.extract_strided_slice %245 {offsets = [0, 233], sizes = [4, 384], strides = [1, 1]} : vector<4x640xf32> to vector<4x384xf32>
    %cst_93 = arith.constant 0.000000e+00 : f32
    %282 = vector.broadcast %cst_93 : f32 to vector<4x384xf32>
    %283 = arith.select %257, %281, %282 : vector<4x384xi1>, vector<4x384xf32>
    %284 = vector.extract_strided_slice %245 {offsets = [0, 240], sizes = [4, 384], strides = [1, 1]} : vector<4x640xf32> to vector<4x384xf32>
    %285 = vector.extract_strided_slice %245 {offsets = [0, 247], sizes = [4, 384], strides = [1, 1]} : vector<4x640xf32> to vector<4x384xf32>
    %cst_94 = arith.constant 0.000000e+00 : f32
    %286 = vector.broadcast %cst_94 : f32 to vector<4x384xf32>
    %287 = arith.select %272, %285, %286 : vector<4x384xi1>, vector<4x384xf32>
    %288 = tpu.concatenate %259, %260, %274, %277, %240, %280, %283, %284, %287 in 0 : vector<4x384xf32>, vector<4x384xf32>, vector<4x384xf32>, vector<4x384xf32>, vector<4x384xf32>, vector<4x384xf32>, vector<4x384xf32>, vector<4x384xf32>, vector<4x384xf32> -> vector<36x384xf32>
    %289 = arith.truncf %288 : vector<36x384xf32> to vector<36x384xbf16>
    %cst_95 = arith.constant dense<0.000000e+00> : vector<4x384xf32>
    %290 = tpu.matmul %242, %289, %cst_95 {dimension_numbers = #tpu.dot_dimension_numbers<[1], [0], [0], [1], [0, 0, 1, 1], [], []>} : vector<4x36xbf16>, vector<36x384xbf16>, vector<4x384xf32> -> vector<4x384xf32>
    %291 = vector.broadcast %243 : vector<4x1xf32> to vector<4x384xf32>
    %292 = arith.addf %290, %291 : vector<4x384xf32>
    %cst_96 = arith.constant 0.000000e+00 : f32
    %293 = vector.broadcast %cst_96 : f32 to vector<4x384xf32>
    %294 = arith.select %22, %292, %293 : vector<4x384xi1>, vector<4x384xf32>
    %295 = tpu.concatenate %170, %294 in 0 : vector<4x384xf32>, vector<4x384xf32> -> vector<8x384xf32>
    %c64 = arith.constant 64 : index
    %c0_97 = arith.constant 0 : index
    %296 = vector.load %arg2[%c64, %c0_97] : memref<72x73xf32, #tpu.memory_space<vmem>>, vector<4x72xf32>
    %297 = arith.truncf %296 : vector<4x72xf32> to vector<4x72xbf16>
    %c64_98 = arith.constant 64 : index
    %c72_99 = arith.constant 72 : index
    %298 = vector.load %arg2[%c64_98, %c72_99] : memref<72x73xf32, #tpu.memory_space<vmem>>, vector<4x1xf32>
    %cst_100 = arith.constant 0.000000e+00 : f32
    %299 = vector.broadcast %cst_100 : f32 to vector<8x128xf32>
    %300 = tpu.concatenate %299, %295, %299 in 1 : vector<8x128xf32>, vector<8x384xf32>, vector<8x128xf32> -> vector<8x640xf32>
    %301 = vector.extract_strided_slice %300 {offsets = [0, 111], sizes = [8, 384], strides = [1, 1]} : vector<8x640xf32> to vector<8x384xf32>
    %c-1_i32_101 = arith.constant -1 : i32
    %302 = vector.broadcast %c-1_i32_101 : i32 to vector<1x384xi32>
    %303 = arith.addi %18, %302 : vector<1x384xi32>
    %c0_i32_102 = arith.constant 0 : i32
    %304 = vector.broadcast %c0_i32_102 : i32 to vector<1x384xi32>
    %305 = arith.cmpi sge, %303, %304 : vector<1x384xi32>
    %c-1_i32_103 = arith.constant -1 : i32
    %306 = vector.broadcast %c-1_i32_103 : i32 to vector<1x384xi32>
    %307 = arith.addi %18, %306 : vector<1x384xi32>
    %c16_i32_104 = arith.constant 16 : i32
    %308 = vector.broadcast %c16_i32_104 : i32 to vector<1x384xi32>
    %309 = arith.cmpi slt, %307, %308 : vector<1x384xi32>
    %310 = arith.andi %305, %309 : vector<1x384xi1>
    %311 = vector.shape_cast %310 : vector<1x384xi1> to vector<1x384xi1>
    %312 = vector.broadcast %311 : vector<1x384xi1> to vector<8x384xi1>
    %cst_105 = arith.constant 0.000000e+00 : f32
    %313 = vector.broadcast %cst_105 : f32 to vector<8x384xf32>
    %314 = arith.select %312, %301, %313 : vector<8x384xi1>, vector<8x384xf32>
    %315 = vector.extract_strided_slice %300 {offsets = [0, 112], sizes = [8, 384], strides = [1, 1]} : vector<8x640xf32> to vector<8x384xf32>
    %316 = vector.extract_strided_slice %300 {offsets = [0, 113], sizes = [8, 384], strides = [1, 1]} : vector<8x640xf32> to vector<8x384xf32>
    %c1_i32_106 = arith.constant 1 : i32
    %317 = vector.broadcast %c1_i32_106 : i32 to vector<1x384xi32>
    %318 = arith.addi %18, %317 : vector<1x384xi32>
    %c0_i32_107 = arith.constant 0 : i32
    %319 = vector.broadcast %c0_i32_107 : i32 to vector<1x384xi32>
    %320 = arith.cmpi sge, %318, %319 : vector<1x384xi32>
    %c1_i32_108 = arith.constant 1 : i32
    %321 = vector.broadcast %c1_i32_108 : i32 to vector<1x384xi32>
    %322 = arith.addi %18, %321 : vector<1x384xi32>
    %c16_i32_109 = arith.constant 16 : i32
    %323 = vector.broadcast %c16_i32_109 : i32 to vector<1x384xi32>
    %324 = arith.cmpi slt, %322, %323 : vector<1x384xi32>
    %325 = arith.andi %320, %324 : vector<1x384xi1>
    %326 = vector.shape_cast %325 : vector<1x384xi1> to vector<1x384xi1>
    %327 = vector.broadcast %326 : vector<1x384xi1> to vector<8x384xi1>
    %cst_110 = arith.constant 0.000000e+00 : f32
    %328 = vector.broadcast %cst_110 : f32 to vector<8x384xf32>
    %329 = arith.select %327, %316, %328 : vector<8x384xi1>, vector<8x384xf32>
    %330 = vector.extract_strided_slice %300 {offsets = [0, 127], sizes = [8, 384], strides = [1, 1]} : vector<8x640xf32> to vector<8x384xf32>
    %cst_111 = arith.constant 0.000000e+00 : f32
    %331 = vector.broadcast %cst_111 : f32 to vector<8x384xf32>
    %332 = arith.select %312, %330, %331 : vector<8x384xi1>, vector<8x384xf32>
    %333 = vector.extract_strided_slice %300 {offsets = [0, 129], sizes = [8, 384], strides = [1, 1]} : vector<8x640xf32> to vector<8x384xf32>
    %cst_112 = arith.constant 0.000000e+00 : f32
    %334 = vector.broadcast %cst_112 : f32 to vector<8x384xf32>
    %335 = arith.select %327, %333, %334 : vector<8x384xi1>, vector<8x384xf32>
    %336 = vector.extract_strided_slice %300 {offsets = [0, 143], sizes = [8, 384], strides = [1, 1]} : vector<8x640xf32> to vector<8x384xf32>
    %cst_113 = arith.constant 0.000000e+00 : f32
    %337 = vector.broadcast %cst_113 : f32 to vector<8x384xf32>
    %338 = arith.select %312, %336, %337 : vector<8x384xi1>, vector<8x384xf32>
    %339 = vector.extract_strided_slice %300 {offsets = [0, 144], sizes = [8, 384], strides = [1, 1]} : vector<8x640xf32> to vector<8x384xf32>
    %340 = vector.extract_strided_slice %300 {offsets = [0, 145], sizes = [8, 384], strides = [1, 1]} : vector<8x640xf32> to vector<8x384xf32>
    %cst_114 = arith.constant 0.000000e+00 : f32
    %341 = vector.broadcast %cst_114 : f32 to vector<8x384xf32>
    %342 = arith.select %327, %340, %341 : vector<8x384xi1>, vector<8x384xf32>
    %343 = tpu.concatenate %314, %315, %329, %332, %295, %335, %338, %339, %342 in 0 : vector<8x384xf32>, vector<8x384xf32>, vector<8x384xf32>, vector<8x384xf32>, vector<8x384xf32>, vector<8x384xf32>, vector<8x384xf32>, vector<8x384xf32>, vector<8x384xf32> -> vector<72x384xf32>
    %344 = arith.truncf %343 : vector<72x384xf32> to vector<72x384xbf16>
    %cst_115 = arith.constant dense<0.000000e+00> : vector<4x384xf32>
    %345 = tpu.matmul %297, %344, %cst_115 {dimension_numbers = #tpu.dot_dimension_numbers<[1], [0], [0], [1], [0, 0, 1, 1], [], []>} : vector<4x72xbf16>, vector<72x384xbf16>, vector<4x384xf32> -> vector<4x384xf32>
    %346 = vector.broadcast %298 : vector<4x1xf32> to vector<4x384xf32>
    %347 = arith.addf %345, %346 : vector<4x384xf32>
    %348 = arith.addf %347, %32 : vector<4x384xf32>
    %cst_116 = arith.constant 0.000000e+00 : f32
    %349 = vector.broadcast %cst_116 : f32 to vector<4x384xf32>
    %350 = arith.maximumf %348, %349 : vector<4x384xf32>
    %c0_117 = arith.constant 0 : index
    %c0_118 = arith.constant 0 : index
    %c0_119 = arith.constant 0 : index
    %351 = vector.load %arg3[%c0_117, %c0_118, %c0_119] : memref<1x4x384xf32, #tpu.memory_space<vmem>>, vector<1x4x384xf32>
    %352 = vector.shape_cast %351 : vector<1x4x384xf32> to vector<4x384xf32>
    %353 = vector.shape_cast %350 : vector<4x384xf32> to vector<1x4x384xf32>
    tpu.vector_store %arg3[%c0_117, %c0_118, %c0_119], %353 {strides = array<i32>} : memref<1x4x384xf32, #tpu.memory_space<vmem>>, vector<1x4x384xf32>,
    return
  }
  func.func @transform_0(%arg0: i32) -> (i32, i32, i32) {
    %c0_i32 = arith.constant 0 : i32
    %c0_i32_0 = arith.constant 0 : i32
    %c0_i32_1 = arith.constant 0 : i32
    return %arg0, %c0_i32, %c0_i32_0 : i32, i32, i32
  }
  func.func @transform_1(%arg0: i32) -> (i32, i32) {
    %c0_i32 = arith.constant 0 : i32
    %c0_i32_0 = arith.constant 0 : i32
    %c0_i32_1 = arith.constant 0 : i32
    return %c0_i32, %c0_i32_0 : i32, i32
  }
  func.func @transform_2(%arg0: i32) -> (i32, i32, i32) {
    %c0_i32 = arith.constant 0 : i32
    %c0_i32_0 = arith.constant 0 : i32
    %c0_i32_1 = arith.constant 0 : i32
    return %arg0, %c0_i32, %c0_i32_0 : i32, i32, i32
  }
}

</mosaic_0001>

<bundles_post_ra>
// kernel: rfb_pruned_forward.1
= control target key start
LH: loop header
LB: loop body
LE: loop exit
PB: predicated region body
PF: predicated region fallthrough
CT: control target
= control target key end

     0   :  { %s2452_s9 = smov 0   ;;  %s3737_s0 = inlined_call_operand.vmem [shape: f32[2,4,384], index: 0, kind: input, shape index: {}]   ;;  %s3738_s1 = inlined_call_operand.vmem [shape: f32[72,73], index: 1, kind: input, shape index: {}]   ;;  %s3739_s2 = inlined_call_operand.vmem [shape: f32[2,4,384], index: 2, kind: output, shape index: {}]  }
   0x1 LB: > { %s1975_s10 = sadd.s32 4294967295, %s2403_s9   ;;  %p1979_p0 = scmp.ge.s32.totalorder %s2403_s9, 1  ;;  %s2403_s9 = sphi %s2452_s9, %s12_s9  }
   0x2   : > { %p112_p1 = scmp.lt.s32.totalorder %s2403_s9, 3 }
   0x4   : > { %p113_p2 = pnand %p1979_p0, %p112_p1 }
   0x6   : > { %116 = sbr.rel (%p113_p2) target bundleno = 2084 (0x824), region = 28 }
   0xb   : > { %p134_p3 = scmp.lt.s32.totalorder %s1975_s10, 1  ;;  %v196_v0 = vld [vmem:[%s3738_s1] sm:$0xff]  ;;  %v2405_v1 = vmov 72   ;;  %vm3754_vm0 = vcmask 1041408   ;;  %v197_v4 = vld [vmem:[%s3738_s1 + $0x8] sm:$0xf]  ;;  %v147_v26 = vlaneseq }
   0xc   : > { %2094 = vset.pattern.permute.xlu0 %v2405_v1  ;;  %2215 = vset.pattern.permute.xlu1 %v2405_v1  ;;  %v198_v13 = vpack.c.bf16 %v197_v4, %v196_v0  ;;  %vm223_vm1 = vcmask 31744   ;;  %v3764_v20 = vmov 0.0   ;;  %s2407_s19 = smov 2   ;;  %s2408_s20 = smov 1   ;;  %v2498_v25 = vld [vmem:[%s3738_s1 + $0x10] sm:$0xf] }
   0xd   : > { %s3922_s10 = smov (!%p134_p3, %s1975_s10), 1  ;;  %215 = vperm.xlu0 %2094, %v196_v0   ;;  %s2409_s21 = smov 126   ;;  %v2507_v27 = vand.u32 127, %v147_v26  ;;  %vm3747_vm2 = vcmask 7168   ;;  %vm419_vm3 = vcmask 1031168   ;;  %vm3750_vm7 = vcmask 15360  }
   0xe   : > { %s2053_s13 = smul.u32 12, %s3922_s10  ;;  %s2410_s22 = smov 127   ;;  %vm3770_vm8 = vcmask 1039360   ;;  %vm3794_vm12 = vcmask 1043456   ;;  %vm465_vm15 = vcmask 162816  }
   0xf   : > { %s2411_s25 = smov 64   ;;  %v149_v28 = vadd.s32 128, %v2507_v27  ;;  %v2515_v31 = vand.u32 15, %v2507_v27  ;;  %s2412_s26 = smov 96  }
  0x10   : > { %s138_s16 = scalar_lea.vmem %s3737_s0, %s2053_s13  ;;  %s2413_s27 = smov 112  }
  0x11   : > { %v145_v2 = vld [vmem:[%s138_s16] sm:$0xff]  ;;  %v146_v3 = vld [vmem:[%s138_s16 + $0x8] sm:$0xf]  ;;  %v2512_v30 = vand.u32 15, %v149_v28  ;;  %v2518_v32 = vadd.s32 2, %v2515_v31  ;;  %v2524_v35 = vadd.s32 4294967295, %v2515_v31  ;;  %s143_s16 = scalar_lea.vmem %s3739_s2, %s2053_s13 }
  0x12   : > { %201 = vst [vmem:[#allocation1] ss:$2 sm:$0xff] %v145_v2  ;;  %v2533_v42 = vadd.s32 4294967294, %v2515_v31  ;;  %v2549_v49 = vadd.s32 1, %v2515_v31  ;;  %s2414_s28 = smov 80   ;;  %s2415_s29 = smov 32  }
  0x13   : > { %203 = vst [vmem:[#allocation1 + $0x10] ss:$2 sm:$0xff] %v146_v3  ;;  %v2521_v33 = vadd.s32 2, %v2512_v30  ;;  %vm399_vm4 = vcmp.lt.s32.totalorder %v2518_v32, 16  ;;  %v2536_v43 = vadd.s32 4294967295, %v2512_v30  ;;  %vm3741_vm6 = vcmp.ge.s32.totalorder %v2524_v35, 0 }
  0x14   : > { %3797 = vst [vmem:[#allocation2_spill] sm:$0xff] %v2524_v35  ;;  %vm3758_vm9 = vcmp.lt.s32.totalorder %v2549_v49, 16  ;;  %vm3746_vm11 = vcmp.ge.s32.totalorder %v2533_v42, 0  ;;  %v2569_v0 = vadd.s32 1, %v2512_v30  ;;  %v2574_v3 = vadd.s32 4294967294, %v2512_v30  ;;  %s2416_s4 = smov 43  }
  0x15   : > { %vm400_vm5 = vcmp.lt.s32.totalorder %v2521_v33, 16  ;;  %3799 = vst [vmem:[#allocation4_spill] sm:$0xff] %v2536_v43  ;;  %vm3740_vm10 = vcmp.ge.s32.totalorder %v2536_v43, 0  ;;  %s2417_s5 = smov 123   ;;  %s2418_s6 = smov 53  }
  0x16   : > { %3800 = vst [vmem:[#allocation5_spill] sm:$0xff] %v2549_v49  ;;  %vm3755_vm13 = vcmp.lt.s32.totalorder %v2569_v0, 16  ;;  %vm3742_vm14 = vcmp.ge.s32.totalorder %v2574_v3, 0  ;;  %s2419_s7 = smov 85   ;;  %s2420_s8 = smov 5  }
  0x17   : > { %3801 = vst [vmem:[#allocation6_spill] sm:$0xff] %v2569_v0  ;;  %s2421_s11 = smov 48   ;;  %s2422_s12 = smov 75  }
  0x18   : > { %s2423_s14 = smov 125   ;;  %s2424_s15 = smov 3  }
  0x19   : > { %v204_v5 = vld.sshfl [vmem:[#allocation1] sm:$0xff pattern:$0x75316420]  ;;  %v205_v6 = vld.sshfl [vmem:[#allocation1 + $0x8] sm:$0xff pattern:$0x75316420] }
  0x1a   : > { %v210_v7 = vpack.c.bf16 %v204_v5, %v204_v5  ;;  %v211_v8 = vpack.c.bf16 %v205_v6, %v205_v6  ;;  %v206_v9 = vld.sshfl [vmem:[#allocation1 + $0x10] sm:$0xff pattern:$0x75316420]  ;;  %s2430_s30 = smov 7   ;;  %s2431_s3 = smov 16  }
  0x1b   : > { %v212_v10 = vpack.c.bf16 %v206_v9, %v206_v9 }
  0x1c   : > { %v229_v11 = vsel %vm3754_vm0, %v210_v7, 0  ;;  %v232_v12 = vsel %vm3754_vm0, %v211_v8, 0 }
  0x1d   : > { %244 = vmatpush.bf16.msra.mxu0 %v229_v11  ;;  %258 = vmatpush.bf16.msra.mxu1 %v232_v12  ;;  %v235_v14 = vsel %vm3754_vm0, %v212_v10, 0  ;;  %v2588_v10 = vpack.c.bf16 %v2498_v25, %v2498_v25 }
  0x1e   : > { %272 = vmatpush.bf16.msra.mxu2 %v235_v14 }
  0x20   : > { %1982 = vmatmul.msk.bf16.vlgmr.msra.gmra.mxu0 %vm223_vm1, %v198_v13  ;;  %1983 = vmatmul.msk.bf16.vlgmr.msra.gmra.mxu1 %vm223_vm1, %v198_v13 }
  0x21   : > { %1984 = vmatmul.msk.bf16.vlgmr.msra.gmra.mxu2 %vm223_vm1, %v198_v13  ;;  %vm3745_vm1 = vcmask 523264  }
  0x7f   : > { %v216_v15 = vpop.permute.xlu0 %215 }
  0x9d   : > { %v246_v16 = vpop.f32.mrf.mxu0  ;;  %v260_v17 = vpop.f32.mrf.mxu1 }
  0x9e   : > { %v2477_v18 = vadd.f32 %v246_v16, %v216_v15  ;;  %v2479_v19 = vadd.f32 %v260_v17, %v216_v15 }
  0xa0   : > { %v2110_v21 = vpack.i.bf16 %v2477_v18, %v3764_v20  ;;  %v2095_v22 = vpack.i.bf16 %v2479_v19, %v2477_v18 }
  0xa2   : > { %2111 = vrot.lane.b32.xlu2 %v2110_v21, %s2407_s19  ;;  %2101 = vrot.lane.b32.xlu1 %v2110_v21, %s2408_s20 }
  0xa3   : > { %2096 = vrot.lane.b32.xlu0 %v2095_v22, %s2409_s21 }
  0xa4   : > { %v274_v23 = vpop.f32.mrf.mxu2 }
  0xa5   : > { %v2488_v24 = vadd.f32 %v274_v23, %v216_v15  ;;  %v2608_v26 = vpop.f32.mrf.mxu0 }
  0xa6   : > { %3802 = vst [vmem:[#allocation7_spill] sm:$0xff] %v2608_v26 }
  0xaa   : > { %415 = vrot.lane.b32.xlu2 %v2488_v24, %s2409_s21  ;;  %2106 = vrot.lane.b32.xlu1 %v2095_v22, %s2410_s22 }
  0xab   : > { %343 = vrot.lane.b32.xlu0 %v2479_v19, %s2408_s20 }
  0xb2   : > { %307 = vrot.lane.b32.xlu2 %v2479_v19, %s2407_s19  ;;  %379 = vrot.lane.b32.xlu1 %v2488_v24, %s2410_s22 }
  0xb3   : > { %462 = vperm.xlu0 %2094, %v2498_v25  }
  0xba   : > { %578 = vrot.lane.b32.xlu2 %v3764_v20, %s2411_s25 }
  0xfc   : > { %v2510_v29 = vpop.permute.xlu2 %2111 }
  0xfd   : > { %v2114_v50 = vunpack.i.h.bf16 %v2510_v29  ;;  %v3759_v51 = vunpack.i.l.bf16 %v2510_v29 }
  0xff   : > { %v312_v61 = vsel %vm3750_vm7, %v3759_v51, %v2114_v50 }
 0x100   : > { %v318_v7 = vsel %vm3746_vm11, %v312_v61, 0.0 }
 0x104   : > { %v2530_v41 = vpop.permute.xlu2 %415 }
 0x10c   : > { %v2576_v5 = vpop.permute.xlu2 %307 }
 0x10d   : > { %v313_v13 = vsel %vm3750_vm7, %v2114_v50, %v2576_v5 }
 0x10e   : > { %v319_v21 = vsel %vm3742_vm14, %v313_v13, 0.0  ;;  %vm566_vm14 = vcmask 654336  }
 0x114   : > { %v2102_v34 = vpop.permute.xlu1 %2101 }
 0x115   : > { %v2104_v36 = vunpack.i.h.bf16 %v2102_v34  ;;  %v2526_v37 = vunpack.i.l.bf16 %v2102_v34  ;;  %v2097_v38 = vpop.permute.xlu0 %2096 }
 0x116   : > { %v2099_v39 = vunpack.i.h.bf16 %v2097_v38  ;;  %v2098_v40 = vunpack.i.l.bf16 %v2097_v38 }
 0x117   : > { %3798 = vst [vmem:[#allocation3_spill] sm:$0xff] %v2526_v37  ;;  %v348_v46 = vsel %vm3747_vm2, %v2526_v37, %v2104_v36 }
 0x118   : > { %v420_v44 = vsel %vm419_vm3, %v2098_v40, %v2099_v39  ;;  %v421_v45 = vsel %vm419_vm3, %v2099_v39, %v2530_v41  ;;  %v354_v57 = vsel %vm3741_vm6, %v348_v46, 0.0  ;;  %v2613_v40 = vrot.slane %v3764_v20, 4 }
 0x119   : > { %v426_v47 = vsel %vm399_vm4, %v420_v44, 0.0  ;;  %v427_v48 = vsel %vm400_vm5, %v421_v45, 0.0  ;;  %v432_v1 = vrot.slane %v354_v57, 4  ;;  %vm3744_vm6 = vcmask 785408  }
 0x11a   : > { %v457_v52 = vpack.c.bf16 %v426_v47, %v426_v47  ;;  %v458_v53 = vpack.c.bf16 %v427_v48, %v427_v48 }
 0x11b   : > { %v448_v8 = vsel %vm3794_vm12, %v318_v7, %v432_v1 }
 0x11c   : > { %v2107_v54 = vpop.permute.xlu1 %2106  ;;  %v470_v55 = vsel %vm3754_vm0, %v457_v52, 0  ;;  %v473_v56 = vsel %vm3754_vm0, %v458_v53, 0 }
 0x11d   : > { %v2109_v58 = vunpack.i.h.bf16 %v2107_v54  ;;  %v2108_v59 = vunpack.i.l.bf16 %v2107_v54  ;;  %v2557_v60 = vpop.permute.xlu0 %343  ;;  %484 = vmatpush.bf16.msra.mxu3 %v470_v55  ;;  %497 = vmatpush.bf16.msrb.mxu0 %v473_v56  ;;  %v2628_v54 = vpop.permute.xlu2 %578 }
 0x11e   : > { %v349_v63 = vsel %vm3747_vm2, %v2104_v36, %v2557_v60 }
 0x11f   : > { %v384_v62 = vsel %vm3770_vm8, %v2108_v59, %v2109_v58  ;;  %v355_v6 = vsel %vm3740_vm10, %v349_v63, 0.0  ;;  %vm3743_vm10 = vcmask 916480  }
 0x120   : > { %v390_v2 = vsel %vm3758_vm9, %v384_v62, 0.0  ;;  %v433_v14 = vrot.slane %v355_v6, 4  ;;  %vm3792_vm9 = vcmask 392192  }
 0x121   : > { %v441_v4 = vrot.slane %v390_v2, 4 }
 0x122   : > { %v449_v22 = vsel %vm3794_vm12, %v319_v21, %v433_v14 }
 0x123   : > { %v451_v9 = vsel %vm3794_vm12, %v2477_v18, %v441_v4 }
 0x124   : > { %v2590_v11 = vpop.permute.xlu1 %379  ;;  %v454_v12 = vpack.c.bf16 %v451_v9, %v448_v8 }
 0x125   : > { %v385_v15 = vsel %vm3770_vm8, %v2109_v58, %v2590_v11  ;;  %v463_v28 = vpop.permute.xlu0 %462 }
 0x126   : > { %v391_v16 = vsel %vm3755_vm13, %v385_v15, 0.0  ;;  %485 = vmatpush.bf16.msra.mxu3 %v454_v12  ;;  %vm730_vm13 = vcmask 695296  }
 0x127   : > { %v442_v17 = vrot.slane %v391_v16, 4 }
 0x129   : > { %1985 = vmatmul.msk.bf16.vlgmr.msra.gmra.mxu3 %vm465_vm15, %v2588_v10  ;;  %v452_v23 = vsel %vm3794_vm12, %v2479_v19, %v442_v17 }
 0x12a   : > { %v455_v25 = vpack.c.bf16 %v452_v23, %v449_v22 }
 0x12c   : > { %498 = vmatpush.bf16.msrb.mxu0 %v455_v25 }
 0x12f   : > { %1986 = vmatmul.msk.bf16.vlgmr.msrb.gmra.mxu0 %vm465_vm15, %v2588_v10 }
 0x1ac   : > { %v487_v34 = vpop.f32.mrf.mxu3  ;;  %v500_v36 = vpop.f32.mrf.mxu0 }
 0x1ad   : > { %v2610_v38 = vadd.f32 %v487_v34, %v463_v28  ;;  %v501_v39 = vadd.f32 %v500_v36, %v463_v28 }
 0x1af   : > { %v2120_v44 = vpack.i.bf16 %v501_v39, %v2610_v38  ;;  %v526_v45 = vrot.slane %v2610_v38, 4  ;;  %v527_v47 = vrot.slane %v501_v39, 4 }
 0x1b1   : > { %2121 = vrot.lane.b32.xlu2 %v2120_v44, %s2412_s26  ;;  %2116 = vrot.lane.b32.xlu1 %v2120_v44, %s2411_s25  ;;  %v2125_v46 = vpack.i.bf16 %v526_v45, %v2613_v40  ;;  %v2130_v52 = vpack.i.bf16 %v2613_v40, %v527_v47  ;;  %v2135_v53 = vpack.i.bf16 %v527_v47, %v526_v45 }
 0x1b3   : > { %2126 = vrot.lane.b32.xlu0 %v2125_v46, %s2413_s27 }
 0x1b4   : > { %v489_v48 = vpop.f32.mrf.mxu3  ;;  %v502_v50 = vpop.f32.mrf.mxu0 }
 0x1b9   : > { %2131 = vrot.lane.b32.xlu1 %v2130_v52, %s2413_s27  ;;  %562 = vrot.lane.b32.xlu2 %v2613_v40, %s2414_s28 }
 0x1bb   : > { %549 = vrot.lane.b32.xlu0 %v3764_v20, %s2412_s26 }
 0x1c1   : > { %2136 = vrot.lane.b32.xlu1 %v2135_v53, %s2414_s28 }
 0x20b   : > { %v2122_v2 = vpop.permute.xlu2 %2121 }
 0x20c   : > { %v2124_v12 = vunpack.i.h.bf16 %v2122_v2  ;;  %v2123_v13 = vunpack.i.l.bf16 %v2122_v2 }
 0x20e   : > { %v552_v28 = vsel %vm3744_vm6, %v2123_v13, %v2124_v12 }
 0x213   : > { %v2649_v21 = vpop.permute.xlu2 %562 }
 0x223   : > { %v2117_v55 = vpop.permute.xlu1 %2116 }
 0x224   : > { %v2119_v56 = vunpack.i.h.bf16 %v2117_v55  ;;  %v2118_v57 = vunpack.i.l.bf16 %v2117_v55 }
 0x225   : > { %v2127_v63 = vpop.permute.xlu0 %2126 }
 0x226   : > { %v602_v58 = vpack.c.bf16 %v2118_v57, %v2118_v57  ;;  %v584_v59 = vsel %vm3745_vm1, %v2119_v56, %v2628_v54  ;;  %v583_v62 = vsel %vm3745_vm1, %v2118_v57, %v2119_v56  ;;  %v2129_v6 = vunpack.i.h.bf16 %v2127_v63 }
 0x227   : > { %v604_v61 = vpack.c.bf16 %v584_v59, %v584_v59  ;;  %v603_v1 = vpack.c.bf16 %v583_v62, %v583_v62  ;;  %v2638_v7 = vunpack.i.l.bf16 %v2127_v63 }
 0x228   : > { %627 = vrot.lane.b32.xlu0 %v602_v58, %s2415_s29 }
 0x229   : > { %631 = vrot.lane.b32.xlu2 %v604_v61, %s2415_s29  ;;  %629 = vrot.lane.b32.xlu1 %v603_v1, %s2415_s29  ;;  %v538_v15 = vsel %vm3743_vm10, %v2638_v7, %v2129_v6 }
 0x22a   : > { %v590_v36 = vsel %vm3794_vm12, 0.0, %v538_v15 }
 0x22b   : > { %v2636_v4 = vpop.permute.xlu1 %2131 }
 0x22c   : > { %v2134_v8 = vunpack.i.h.bf16 %v2636_v4  ;;  %v2133_v9 = vunpack.i.l.bf16 %v2636_v4  ;;  %v2216_v4 = vpack.i.bf16 %v2613_v40, %v2613_v40 }
 0x22d   : > { %v2642_v14 = vpop.permute.xlu0 %549 }
 0x22e   : > { %v540_v16 = vsel %vm3743_vm10, %v2133_v9, %v2134_v8  ;;  %v539_v22 = vsel %vm3743_vm10, %v2129_v6, %v2133_v9  ;;  %v553_v34 = vsel %vm3744_vm6, %v2124_v12, %v2642_v14  ;;  %vm3788_vm10 = vcmask 261120  }
 0x22f   : > { %v592_v47 = vsel %vm3794_vm12, %v501_v39, %v540_v16  ;;  %v591_v52 = vsel %vm3794_vm12, %v2610_v38, %v539_v22  ;;  %v520_v39 = vld [vmem:[%s3738_s1 + $0x18] sm:$0xf]  ;;  %v979_v38 = vrot.slane %v2477_v18, 4  ;;  %v150_v22 = vadd.s32 256, %v2507_v27 }
 0x230   : > { %v2697_v15 = vpack.c.bf16 %v520_v39, %v520_v39 }
 0x231   : > { %v2679_v57 = vpack.i.bf16 %v979_v38, %v3764_v20 }
 0x233   : > { %v2137_v17 = vpop.permute.xlu1 %2136 }
 0x234   : > { %v2139_v23 = vunpack.i.h.bf16 %v2137_v17  ;;  %v2138_v25 = vunpack.i.l.bf16 %v2137_v17 }
 0x236   : > { %v567_v44 = vsel %vm566_vm14, %v2138_v25, %v2139_v23  ;;  %v568_v45 = vsel %vm566_vm14, %v2139_v23, %v2649_v21  ;;  %v594_v46 = vsel %vm3794_vm12, %v2123_v13, %v2138_v25 }
 0x237   : > { %v596_v48 = vsel %vm3794_vm12, %v553_v34, %v568_v45  ;;  %v598_v50 = vpack.c.bf16 %v594_v46, %v590_v36  ;;  %v595_v53 = vsel %vm3794_vm12, %v552_v28, %v567_v44  ;;  %v2709_v28 = vand.u32 15, %v150_v22 }
 0x238   : > { %v600_v55 = vpack.c.bf16 %v596_v48, %v592_v47  ;;  %v599_v56 = vpack.c.bf16 %v595_v53, %v591_v52 }
 0x239   : > { %619 = vrot.lane.b32.xlu0 %v598_v50, %s2415_s29  ;;  %v2721_v45 = vadd.s32 2, %v2709_v28  ;;  %v2724_v46 = vadd.s32 1, %v2709_v28  ;;  %v2727_v47 = vadd.s32 4294967295, %v2709_v28 }
 0x23a   : > { %623 = vrot.lane.b32.xlu2 %v600_v55, %s2415_s29  ;;  %621 = vrot.lane.b32.xlu1 %v599_v56, %s2415_s29  ;;  %v2741_v55 = vadd.s32 4294967294, %v2709_v28 }
 0x23b   : > { %3804 = vst [vmem:[#allocation9_spill] sm:$0xff] %v2724_v46  ;;  %vm401_vm6 = vcmp.lt.s32.totalorder %v2721_v45, 16  ;;  %vm3748_vm11 = vcmp.ge.s32.totalorder %v2727_v47, 0 }
 0x241   : > { %608 = vperm.xlu0 %2094, %v520_v39  }
 0x242   : > { %564 = vrot.lane.b32.xlu2 %v2613_v40, %s2414_s28  ;;  %580 = vrot.lane.b32.xlu1 %v3764_v20, %s2411_s25 }
 0x249   : > { %2141 = vrot.lane.b32.xlu0 %v2679_v57, %s2409_s21 }
 0x24a   : > { %345 = vrot.lane.b32.xlu1 %v2488_v24, %s2408_s20  ;;  %2146 = vrot.lane.b32.xlu2 %v2679_v57, %s2410_s22 }
 0x251   : > { %309 = vrot.lane.b32.xlu0 %v2488_v24, %s2407_s19 }
 0x283   : > { %v632_v58 = vpop.permute.xlu2 %631 }
 0x294   : > { %v2693_v6 = vpop.permute.xlu2 %623 }
 0x29a   : > { %v628_v59 = vpop.permute.xlu0 %627 }
 0x29b   : > { %v630_v61 = vpop.permute.xlu1 %629 }
 0x29c   : > { %v639_v62 = vsel %vm3788_vm10, %v628_v59, %v630_v61  ;;  %v640_v63 = vsel %vm3788_vm10, %v630_v61, %v632_v58  ;;  %v2695_v9 = vpop.permute.xlu2 %564 }
 0x29d   : > { %v649_v1 = vsel %vm3754_vm0, %v639_v62, 0  ;;  %v652_v2 = vsel %vm3754_vm0, %v640_v63, 0 }
 0x29e   : > { %663 = vmatpush.bf16.msrb.mxu2 %v649_v1  ;;  %676 = vmatpush.bf16.msrb.mxu3 %v652_v2 }
 0x2a4   : > { %v2711_v34 = vpop.permute.xlu2 %2146 }
 0x2a5   : > { %v2717_v27 = vunpack.i.l.bf16 %v2711_v34 }
 0x2a7   : > { %3803 = vst [vmem:[#allocation8_spill] sm:$0xff] %v2717_v27 }
 0x2ab   : > { %v620_v12 = vpop.permute.xlu0 %619 }
 0x2ac   : > { %v622_v13 = vpop.permute.xlu1 %621 }
 0x2ad   : > { %v636_v16 = vsel %vm3788_vm10, %v620_v12, %v622_v13  ;;  %v637_v17 = vsel %vm3788_vm10, %v622_v13, %v2693_v6 }
 0x2ae   : > { %664 = vmatpush.bf16.msrb.mxu2 %v636_v16  ;;  %677 = vmatpush.bf16.msrb.mxu3 %v637_v17 }
 0x2b1   : > { %1988 = vmatmul.msk.bf16.vlgmr.msrb.gmra.mxu2 %vm465_vm15, %v2697_v15  ;;  %1989 = vmatmul.msk.bf16.vlgmr.msrb.gmra.mxu3 %vm465_vm15, %v2697_v15 }
 0x2b3   : > { %v609_v23 = vpop.permute.xlu0 %608 }
 0x2b4   : > { %v2707_v25 = vpop.permute.xlu1 %580 }
 0x2b5   : > { %v585_v36 = vsel %vm3745_vm1, %v2628_v54, %v2707_v25  ;;  %v386_v54 = vsel %vm3770_vm8, %v2590_v11, %v2717_v27  ;;  %vm3769_vm1 = vcmp.lt.s32.totalorder %v2724_v46, 16 }
 0x2b6   : > { %v605_v44 = vpack.c.bf16 %v585_v36, %v585_v36  ;;  %v392_v39 = vsel %vm3769_vm1, %v386_v54, 0.0  ;;  %v2765_v36 = vpop.f32.mrf.mxu2 }
 0x2b7   : > { %v443_v62 = vrot.slane %v392_v39, 4  ;;  %3805 = vst [vmem:[#allocation10_spill] sm:$0xff] %v2765_v36 }
 0x2b8   : > { %633 = vrot.lane.b32.xlu0 %v605_v44, %s2415_s29 }
 0x2b9   : > { %v453_v13 = vsel %vm3794_vm12, %v2488_v24, %v443_v62 }
 0x2bb   : > { %v2729_v48 = vpop.permute.xlu0 %2141 }
 0x2bc   : > { %v2143_v50 = vunpack.i.l.bf16 %v2729_v48  ;;  %v346_v52 = vpop.permute.xlu1 %345 }
 0x2bd   : > { %v350_v53 = vsel %vm3747_vm2, %v2557_v60, %v346_v52  ;;  %vm3749_vm2 = vcmp.ge.s32.totalorder %v2741_v55, 0 }
 0x2be   : > { %v422_v11 = vsel %vm419_vm3, %v2530_v41, %v2143_v50  ;;  %v356_v61 = vsel %vm3748_vm11, %v350_v53, 0.0  ;;  %vm3751_vm11 = vcmask 351232  }
 0x2bf   : > { %v428_v56 = vsel %vm401_vm6, %v422_v11, 0.0  ;;  %v434_v1 = vrot.slane %v356_v61, 4  ;;  %v2784_v61 = vpop.f32.mrf.mxu1 }
 0x2c0   : > { %v459_v59 = vpack.c.bf16 %v428_v56, %v428_v56  ;;  %v2778_v56 = vrot.slane %v2488_v24, 4  ;;  %3806 = vst [vmem:[#allocation11_spill] sm:$0xff] %v2784_v61 }
 0x2c2   : > { %v476_v60 = vsel %vm3754_vm0, %v459_v59, 0 }
 0x2c3   : > { %v310_v63 = vpop.permute.xlu0 %309  ;;  %510 = vmatpush.bf16.msrb.mxu1 %v476_v60 }
 0x2c4   : > { %v314_v41 = vsel %vm3750_vm7, %v2576_v5, %v310_v63  ;;  %vm3753_vm7 = vcmask 1006592  }
 0x2c5   : > { %v320_v2 = vsel %vm3749_vm2, %v314_v41, 0.0 }
 0x2c6   : > { %v450_v12 = vsel %vm3794_vm12, %v320_v2, %v434_v1  ;;  %v569_v1 = vsel %vm566_vm14, %v2649_v21, %v2695_v9 }
 0x2c7   : > { %v456_v16 = vpack.c.bf16 %v453_v13, %v450_v12  ;;  %v597_v2 = vsel %vm3794_vm12, %v2642_v14, %v569_v1  ;;  %v593_v12 = vsel %vm3794_vm12, 0.0, %v2134_v8 }
 0x2c8   : > { %v601_v13 = vpack.c.bf16 %v597_v2, %v593_v12 }
 0x2c9   : > { %511 = vmatpush.bf16.msrb.mxu1 %v456_v16 }
 0x2cc   : > { %1987 = vmatmul.msk.bf16.vlgmr.msrb.gmra.mxu1 %vm465_vm15, %v2588_v10 }
 0x32a   : > { %v634_v17 = vpop.permute.xlu0 %633 }
 0x32b   : > { %v641_v22 = vsel %vm3788_vm10, %v632_v58, %v634_v17 }
 0x32c   : > { %v655_v5 = vsel %vm3754_vm0, %v641_v22, 0 }
 0x32d   : > { %689 = vmatpush.bf16.msra.mxu0 %v655_v5 }
 0x334   : > { %v666_v44 = vpop.f32.mrf.mxu2  ;;  %v679_v54 = vpop.f32.mrf.mxu3 }
 0x335   : > { %v2768_v52 = vadd.f32 %v666_v44, %v609_v23  ;;  %v2770_v53 = vadd.f32 %v679_v54, %v609_v23  ;;  %v980_v23 = vrot.slane %v2479_v19, 4 }
 0x337   : > { %v2150_v11 = vpack.i.bf16 %v2770_v53, %v2768_v52  ;;  %v2170_v39 = vpack.i.bf16 %v2768_v52, %v3764_v20  ;;  %v2190_v59 = vpack.i.bf16 %v2778_v56, %v980_v23  ;;  %v848_v60 = vrot.slane %v2768_v52, 4 }
 0x338   : > { %v3757_v62 = vrot.slane %v2770_v53, 4  ;;  %v2200_v21 = vpack.i.bf16 %v980_v23, %v979_v38 }
 0x339   : > { %2151 = vrot.lane.b32.xlu1 %v2150_v11, %s2416_s4  ;;  %2156 = vrot.lane.b32.xlu2 %v2150_v11, %s2417_s5 }
 0x33a   : > { %2161 = vrot.lane.b32.xlu0 %v2150_v11, %s2418_s6  ;;  %v2180_v63 = vpack.i.bf16 %v3757_v62, %v848_v60 }
 0x33c   : > { %v668_v10 = vpop.f32.mrf.mxu2  ;;  %v681_v58 = vpop.f32.mrf.mxu3 }
 0x341   : > { %2171 = vrot.lane.b32.xlu1 %v2170_v39, %s2419_s7  ;;  %2166 = vrot.lane.b32.xlu2 %v2170_v39, %s2420_s8 }
 0x342   : > { %2191 = vrot.lane.b32.xlu0 %v2190_v59, %s2410_s22 }
 0x349   : > { %2181 = vrot.lane.b32.xlu1 %v2180_v63, %s2421_s11  ;;  %2176 = vrot.lane.b32.xlu2 %v2170_v39, %s2422_s12  ;;  %v513_v41 = vpop.f32.mrf.mxu1 }
 0x34a   : > { %851 = vrot.lane.b32.xlu0 %v848_v60, %s2414_s28 }
 0x351   : > { %625 = vrot.lane.b32.xlu1 %v601_v13, %s2415_s29  ;;  %2186 = vrot.lane.b32.xlu2 %v2190_v59, %s2409_s21  ;;  %v515_v16 = vpop.f32.mrf.mxu1 }
 0x352   : > { %2201 = vrot.lane.b32.xlu0 %v2200_v21, %s2407_s19 }
 0x359   : > { %2196 = vrot.lane.b32.xlu1 %v2200_v21, %s2423_s14  ;;  %1100 = vrot.lane.b32.xlu2 %v2778_v56, %s2423_s14 }
 0x35a   : > { %2211 = vrot.lane.b32.xlu0 %v2200_v21, %s2408_s20  ;;  %v701_v21 = vadd.s32 4294967291, %v2515_v31 }
 0x361   : > { %2206 = vrot.lane.b32.xlu1 %v2679_v57, %s2424_s15  ;;  %1004 = vrot.lane.b32.xlu2 %v980_v23, %s2424_s15  ;;  %v2830_v57 = vadd.s32 5, %v2515_v31 }
 0x362   : > { %1260 = vrot.lane.b32.xlu0 %v3764_v20, %s2411_s25 }
 0x363   : > { %vm746_vm2 = vcmp.lt.s32.totalorder %v2830_v57, 16 }
 0x369   : > { %2217 = vrot.lane.b32.xlu2 %v2216_v4, %s2421_s11 }
 0x36a   : > { %1220 = vrot.lane.b32.xlu0 %v2613_v40, %s2413_s27 }
 0x393   : > { %v2823_v8 = vpop.permute.xlu2 %2156 }
 0x394   : > { %v3752_v23 = vunpack.i.h.bf16 %v2823_v8  ;;  %v2158_v39 = vunpack.i.l.bf16 %v2823_v8 }
 0x396   : > { %v803_v2 = vsel %vm3753_vm7, %v2158_v39, %v3752_v23  ;;  %vm704_vm7 = vcmp.ge.s32.totalorder %v701_v21, 0 }
 0x397   : > { %v809_v45 = vsel %vm746_vm2, %v803_v2, 0.0 }
 0x398   : > { %v875_v2 = vrot.slane %v809_v45, 4 }
 0x39a   : > { %v902_v20 = vsel %vm3794_vm12, %v2768_v52, %v875_v2  ;;  %v2929_v52 = vld [vmem:[%s3738_s1 + $0x20] sm:$0xf] }
 0x39b   : > { %v2825_v14 = vpop.permute.xlu2 %2166 }
 0x39c   : > { %v2168_v16 = vunpack.i.l.bf16 %v2825_v14 }
 0x3a3   : > { %v2827_v38 = vpop.permute.xlu2 %2176 }
 0x3ab   : > { %v2832_v17 = vpop.permute.xlu1 %2151  ;;  %v2834_v22 = vpop.permute.xlu2 %2186 }
 0x3ac   : > { %v3756_v5 = vunpack.i.h.bf16 %v2832_v17  ;;  %v2153_v44 = vunpack.i.l.bf16 %v2832_v17  ;;  %v2838_v54 = vpop.permute.xlu0 %2161  ;;  %v3763_v10 = vunpack.i.h.bf16 %v2834_v22  ;;  %v3808_v2 = vunpack.i.h.bf16 %v2834_v22 }
 0x3ad   : > { %v3760_v4 = vunpack.i.h.bf16 %v2838_v54 }
 0x3ae   : > { %v839_v11 = vsel %vm3751_vm11, %v2153_v44, %v3756_v5  ;;  %v1071_v60 = vsel %vm419_vm3, %v3763_v10, %v2143_v50  ;;  %vm784_vm11 = vcmask 39936   ;;  %v3761_v50 = vunpack.i.h.bf16 %v2825_v14 }
 0x3af   : > { %v845_v58 = vsel %vm746_vm2, %v839_v11, 0.0  ;;  %v1077_v12 = vsel %vm401_vm6, %v1071_v60, 0.0  ;;  %v2163_v44 = vunpack.i.l.bf16 %v2838_v54  ;;  %vm820_vm6 = vcmask 433152  }
 0x3b0   : > { %v914_v59 = vpack.c.bf16 %v845_v58, %v845_v58  ;;  %v3766_v58 = vunpack.i.h.bf16 %v2827_v38  ;;  %v1128_v39 = vrot.slane %v1077_v12, 4  ;;  %v785_v12 = vsel %vm784_vm11, %v2168_v16, %v3761_v50 }
 0x3b1   : > { %v821_v62 = vsel %vm820_vm6, %v2163_v44, %v3760_v4  ;;  %v791_v4 = vsel %vm704_vm7, %v785_v12, 0.0 }
 0x3b2   : > { %v927_v1 = vsel %vm3754_vm0, %v914_v59, 0  ;;  %v2178_v59 = vunpack.i.l.bf16 %v2827_v38  ;;  %vm766_vm0 = vcmask 613376   ;;  %v827_v10 = vsel %vm704_vm7, %v821_v62, 0.0 }
 0x3b3   : > { %v2854_v63 = vpop.permute.xlu1 %2171  ;;  %940 = vmatpush.bf16.msra.mxu1 %v927_v1 }
 0x3b4   : > { %v2857_v41 = vpop.permute.xlu0 %2191  ;;  %v3767_v60 = vunpack.i.h.bf16 %v2854_v63  ;;  %v2173_v1 = vunpack.i.l.bf16 %v2854_v63  ;;  %v767_v16 = vsel %vm766_vm0, %v2178_v59, %v3766_v58  ;;  %v2188_v58 = vunpack.i.l.bf16 %v2834_v22  ;;  %v2962_v22 = vpop.permute.xlu2 %1100 }
 0x3b5   : > { %v3762_v13 = vunpack.i.h.bf16 %v2857_v41 }
 0x3b6   : > { %v731_v44 = vsel %vm730_vm13, %v2173_v1, %v3767_v60  ;;  %v773_v60 = vsel %vm746_vm2, %v767_v16, 0.0  ;;  %vm3793_vm2 = vcmask 293888   ;;  %v1070_v16 = vsel %vm419_vm3, %v2188_v58, %v3808_v2 }
 0x3b7   : > { %v1056_v11 = vsel %vm3770_vm8, %v3762_v13, %v2717_v27  ;;  %v737_v1 = vsel %vm704_vm7, %v731_v44, 0.0  ;;  %v1079_v44 = vadd.s32 3, %v2512_v30  ;;  %v1076_v32 = vsel %vm400_vm5, %v1070_v16, 0.0 }
 0x3b8   : > { %v1062_v23 = vsel %vm3769_vm1, %v1056_v11, 0.0  ;;  %v2896_v11 = vld [vmem:[%s3738_s1 + $0x28] sm:$0xf]  ;;  %vm3811_vm7 = vcmp.lt.s32.totalorder %v2569_v0, 16  ;;  %vm3772_vm5 = vcmask 1045504  }
 0x3b9   : > { %v2883_v5 = vsel %vm3794_vm12, %v1062_v23, %v1128_v39  ;;  %1149 = vperm.xlu1 %2215, %v2896_v11  }
 0x3bb   : > { %v2891_v51 = vpop.permute.xlu1 %2181 }
 0x3bc   : > { %v3768_v23 = vunpack.i.h.bf16 %v2891_v51  ;;  %v2183_v45 = vunpack.i.l.bf16 %v2891_v51  ;;  %v2900_v39 = vpop.permute.xlu0 %851 }
 0x3bd   : > { %v857_v13 = vsel %vm566_vm14, %v2695_v9, %v2900_v39  ;;  %v2144_v9 = vunpack.i.h.bf16 %v2729_v48  ;;  %v3807_v48 = vmov 0.0  }
 0x3be   : > { %v890_v50 = vsel %vm3792_vm9, %v2183_v45, %v3768_v23  ;;  %v866_v45 = vrot.slane %v791_v4, 4  ;;  %v896_v23 = vsel %vm3794_vm12, %v737_v1, %v857_v13  ;;  %v2942_v4 = vpack.c.bf16 %v2929_v52, %v2929_v52 }
 0x3bf   : > { %v905_v59 = vsel %vm3794_vm12, %v827_v10, %v890_v50  ;;  %v1069_v21 = vsel %vm419_vm3, %v2144_v9, %v2188_v58  ;;  %v3809_v1 = vunpack.i.h.bf16 %v2857_v41  ;;  %vm3771_vm3 = vcmask 1022976  }
 0x3c0   : > { %v911_v12 = vpack.c.bf16 %v905_v59, %v902_v20  ;;  %v899_v10 = vsel %vm3794_vm12, %v773_v60, %v866_v45  ;;  %v2193_v20 = vunpack.i.l.bf16 %v2857_v41  ;;  %v2149_v60 = vunpack.i.h.bf16 %v2711_v34 }
 0x3c1   : > { %v908_v50 = vpack.c.bf16 %v899_v10, %v896_v23  ;;  %1286 = vrot.lane.b32.xlu1 %v3807_v48, %s2415_s29  ;;  %v1078_v23 = vadd.s32 3, %v2515_v31 }
 0x3c2   : > { %941 = vmatpush.bf16.msra.mxu1 %v911_v12  ;;  %v1054_v59 = vsel %vm3770_vm8, %v2149_v60, %v2193_v20  ;;  %v1055_v12 = vsel %vm3770_vm8, %v2193_v20, %v3809_v1  ;;  %vm1085_vm8 = vcmp.lt.s32.totalorder %v1079_v44, 16  ;;  %v982_v20 = vadd.s32 4294967293, %v2515_v31 }
 0x3c3   : > { %v626_v62 = vpop.permute.xlu1 %625  ;;  %v1061_v41 = vsel %vm3811_vm7, %v1055_v12, 0.0  ;;  %vm1084_vm1 = vcmp.lt.s32.totalorder %v1078_v23, 16  ;;  %v3812_v12 = vunpack.i.l.bf16 %v2510_v29  ;;  %vm3815_vm7 = vcmask 7168  }
 0x3c4   : > { %v2934_v57 = vpop.permute.xlu0 %2201  ;;  %v638_v13 = vsel %vm3788_vm10, %v2693_v6, %v626_v62  ;;  %v1075_v6 = vsel %vm399_vm4, %v1069_v21, 0.0  ;;  %vm3810_vm4 = vcmp.lt.s32.totalorder %v2549_v49, 16  ;;  %v1127_v21 = vrot.slane %v1076_v32, 4 }
 0x3c5   : > { %690 = vmatpush.bf16.msra.mxu0 %v638_v13  ;;  %v1126_v34 = vrot.slane %v1075_v6, 4  ;;  %v1060_v58 = vsel %vm3810_vm4, %v1054_v59, 0.0  ;;  %v2203_v9 = vunpack.i.l.bf16 %v2934_v57  ;;  %v983_v13 = vadd.s32 4294967293, %v2512_v30 }
 0x3c6   : > { %942 = vmatpush.bf16.msra.mxu1 %v908_v50  ;;  %v1139_v1 = vsel %vm3794_vm12, %v1061_v41, %v1127_v21 }
 0x3c7   : > { %v1138_v23 = vsel %vm3794_vm12, %v1060_v58, %v1126_v34 }
 0x3c8   : > { %1990 = vmatmul.msk.bf16.vlgmr.msra.gmra.mxu0 %vm465_vm15, %v2697_v15  ;;  %v3773_v15 = vunpack.i.h.bf16 %v2934_v57  ;;  %vm3813_vm15 = vcmask 15360  }
 0x3c9   : > { %1991 = vmatmul.msk.bf16.vlgmr.msra.gmra.mxu1 %vm3793_vm2, %v2942_v4  ;;  %v1024_v32 = vsel %vm3813_vm15, %v3812_v12, %v2203_v9  ;;  %vm3814_vm4 = vmmov %vm3813_vm15  ;;  %vm3819_vm15 = vcmp.ge.s32.totalorder %v2574_v3, 0 }
 0x3cb   : > { %v2197_v45 = vpop.permute.xlu1 %2196 }
 0x3cc   : > { %v2199_v62 = vunpack.i.h.bf16 %v2197_v45  ;;  %v2198_v33 = vunpack.i.l.bf16 %v2197_v45  ;;  %v2970_v10 = vpop.permute.xlu0 %2211  ;;  %v1025_v45 = vsel %vm3814_vm4, %v2203_v9, %v3773_v15  ;;  %vm3774_vm4 = vcmask 23552  }
 0x3cd   : > { %v2213_v16 = vunpack.i.l.bf16 %v2970_v10  ;;  %v1031_v41 = vsel %vm3819_vm15, %v1025_v45, 0.0 }
 0x3ce   : > { %v1105_v50 = vsel %vm3771_vm3, %v2198_v33, %v2199_v62  ;;  %v1106_v60 = vsel %vm3771_vm3, %v2199_v62, %v2962_v22  ;;  %vm986_vm3 = vcmp.ge.s32.totalorder %v983_v13, 0 }
 0x3cf   : > { %v1111_v6 = vsel %vm1084_vm1, %v1105_v50, 0.0  ;;  %v1112_v59 = vsel %vm1085_vm8, %v1106_v60, 0.0  ;;  %v1039_v2 = vsel %vm3815_vm7, %v2526_v37, %v2213_v16  ;;  %v3816_v50 = vunpack.i.h.bf16 %v2970_v10  ;;  %vm3817_vm1 = vmmov %vm3815_vm7 }
 0x3d0   : > { %v1144_v62 = vpack.c.bf16 %v1111_v6, %v1138_v23  ;;  %v1145_v33 = vpack.c.bf16 %v1112_v59, %v1139_v1  ;;  %vm3818_vm8 = vcmp.ge.s32.totalorder %v2533_v42, 0  ;;  %vm985_vm7 = vcmp.ge.s32.totalorder %v982_v20, 0  ;;  %v2999_v6 = vpop.permute.xlu2 %1004 }
 0x3d1   : > { %v1040_v44 = vsel %vm3817_vm1, %v2213_v16, %v3816_v50  ;;  %v1030_v29 = vsel %vm3818_vm8, %v1024_v32, 0.0  ;;  %vm3820_vm1 = vcmp.ge.s32.totalorder %v2524_v35, 0  ;;  %v1118_v59 = vrot.slane %v1031_v41, 4 }
 0x3d2   : > { %v1158_v34 = vsel %vm3772_vm5, %v1144_v62, 0  ;;  %v1161_v58 = vsel %vm3772_vm5, %v1145_v33, 0  ;;  %v1045_v16 = vsel %vm3820_vm1, %v1039_v2, 0.0  ;;  %vm3821_vm5 = vcmp.ge.s32.totalorder %v2536_v43, 0 }
 0x3d3   : > { %v2207_v9 = vpop.permute.xlu1 %2206  ;;  %1172 = vmatpush.bf16.msrb.mxu0 %v1158_v34  ;;  %1185 = vmatpush.bf16.msrb.mxu1 %v1161_v58  ;;  %v1046_v42 = vsel %vm3821_vm5, %v1040_v44, 0.0  ;;  %v1117_v23 = vrot.slane %v1030_v29, 4  ;;  %v1135_v13 = vsel %vm3794_vm12, %v1045_v16, %v2477_v18  ;;  %v3016_v50 = vpack.c.bf16 %v2896_v11, %v2896_v11 }
 0x3d4   : > { %v2209_v21 = vunpack.i.h.bf16 %v2207_v9  ;;  %v2208_v60 = vunpack.i.l.bf16 %v2207_v9  ;;  %v1136_v2 = vsel %vm3794_vm12, %v1046_v42, %v2479_v19  ;;  %vm3791_vm5 = vcmask 228352  }
 0x3d5   : > { %vm3826_vm8 = vcmask 351232   ;;  %vm3828_vm1 = vcmask 523264  }
 0x3d6   : > { %v1009_v3 = vsel %vm3774_vm4, %v2208_v60, %v2209_v21  ;;  %v1010_v1 = vsel %vm3774_vm4, %v2209_v21, %v2999_v6  ;;  %vm3827_vm15 = vmmov %vm3826_vm8 }
 0x3d7   : > { %v1015_v12 = vsel %vm985_vm7, %v1009_v3, 0.0  ;;  %v1016_v32 = vsel %vm986_vm3, %v1010_v1, 0.0  ;;  %vm3829_vm4 = vmmov %vm3828_vm1 }
 0x3d8   : > { %v1132_v20 = vsel %vm3794_vm12, %v1015_v12, %v1117_v23  ;;  %v1133_v45 = vsel %vm3794_vm12, %v1016_v32, %v1118_v59  ;;  %v2271_v12 = vpack.i.bf16 0.0, %v2770_v53  ;;  %v3823_v32 = vrot.slane %v2770_v53, 4 }
 0x3d9   : > { %v1141_v62 = vpack.c.bf16 %v1135_v13, %v1132_v20  ;;  %v1142_v33 = vpack.c.bf16 %v1136_v2, %v1133_v45  ;;  %v3060_v13 = vpop.permute.xlu2 %2217  ;;  %v3062_v2 = vpop.permute.xlu0 %1260 }
 0x3da   : > { %v2286_v20 = vpack.i.bf16 %v2613_v40, %v3823_v32 }
 0x3db   : > { %1173 = vmatpush.bf16.msrb.mxu0 %v1141_v62  ;;  %1186 = vmatpush.bf16.msrb.mxu1 %v1142_v33 }
 0x3de   : > { %1998 = vmatmul.msk.bf16.vlgmr.msrb.gmra.mxu0 %vm3791_vm5, %v3016_v50  ;;  %1999 = vmatmul.msk.bf16.vlgmr.msrb.gmra.mxu1 %vm3791_vm5, %v3016_v50 }
 0x42b   : > { %v1150_v58 = vpop.permute.xlu1 %1149 }
 0x433   : > { %v3066_v33 = vpop.permute.xlu1 %1286 }
 0x434   : > { %3824 = vst [vmem:[#allocation13_spill] sm:$0xff] %v3066_v33 }
 0x445   : > { %v692_v18 = vpop.f32.mrf.mxu0 }
 0x446   : > { %v3022_v44 = vpop.f32.mrf.mxu1  ;;  %v1221_v18 = vpop.permute.xlu0 %1220 }
 0x447   : > { %3822 = vst [vmem:[#allocation12_spill] sm:$0xff] %v3022_v44 }
 0x44d   : > { %v694_v34 = vpop.f32.mrf.mxu0 }
 0x44e   : > { %v946_v19 = vpop.f32.mrf.mxu1 }
 0x44f   : > { %v3071_v19 = vadd.s32 5, %v2512_v30 }
 0x451   : > { %vm747_vm3 = vcmp.lt.s32.totalorder %v3071_v19, 16 }
 0x45b   : > { %v1175_v29 = vpop.f32.mrf.mxu0  ;;  %v1188_v41 = vpop.f32.mrf.mxu1 }
 0x45c   : > { %v3024_v9 = vadd.f32 %v1175_v29, %v1150_v58  ;;  %v3026_v11 = vadd.f32 %v1188_v41, %v1150_v58  ;;  %v3074_v41 = vadd.s32 5, %v2709_v28 }
 0x45e   : > { %v2221_v21 = vpack.i.bf16 %v3024_v9, %v3807_v48  ;;  %v2231_v60 = vpack.i.bf16 %v3026_v11, %v3024_v9  ;;  %v1213_v16 = vrot.slane %v3024_v9, 4  ;;  %v1214_v42 = vrot.slane %v3026_v11, 4 }
 0x45f   : > { %v2236_v1 = vpack.i.bf16 0.0, %v3026_v11  ;;  %vm748_vm7 = vcmp.lt.s32.totalorder %v3074_v41, 16 }
 0x460   : > { %2222 = vrot.lane.b32.xlu1 %v2221_v21, %s2412_s26  ;;  %2232 = vrot.lane.b32.xlu0 %v2231_v60, %s2415_s29  ;;  %v2256_v3 = vpack.i.bf16 %v1214_v42, %v1213_v16 }
 0x461   : > { %2227 = vrot.lane.b32.xlu2 %v2231_v60, %s2411_s25  ;;  %s2427_s25 = smov 121  }
 0x463   : > { %v1177_v23 = vpop.f32.mrf.mxu0  ;;  %v1190_v59 = vpop.f32.mrf.mxu1 }
 0x464   : > { %v3825_v59 = vunpack.i.h.bf16 %v2832_v17 }
 0x468   : > { %2257 = vrot.lane.b32.xlu0 %v2256_v3, %s2414_s28  ;;  %2242 = vrot.lane.b32.xlu1 %v2256_v3, %s2421_s11 }
 0x469   : > { %2237 = vrot.lane.b32.xlu2 %v2236_v1, %s2412_s26  ;;  %s2428_s26 = smov 9  }
 0x470   : > { %2262 = vrot.lane.b32.xlu0 %v3807_v48, %s2417_s5  ;;  %1248 = vrot.lane.b32.xlu1 %v2613_v40, %s2414_s28 }
 0x471   : > { %2247 = vrot.lane.b32.xlu2 %v2256_v3, %s2413_s27 }
 0x478   : > { %2272 = vrot.lane.b32.xlu0 %v2271_v12, %s2420_s8  ;;  %2267 = vrot.lane.b32.xlu1 %v3807_v48, %s2418_s6  ;;  %s2435_s8 = smov 113  }
 0x479   : > { %2252 = vrot.lane.b32.xlu2 %v3807_v48, %s2416_s4  ;;  %s2432_s4 = smov 105  }
 0x480   : > { %2287 = vrot.lane.b32.xlu0 %v2286_v20, %s2414_s28  ;;  %2277 = vrot.lane.b32.xlu1 %v2271_v12, %s2419_s7  ;;  %v2219_v20 = vunpack.i.l.bf16 %v3060_v13  ;;  %s2429_s28 = smov 119   ;;  %s2433_s7 = smov 15  }
 0x481   : > { %887 = vrot.lane.b32.xlu2 %v2613_v40, %s2421_s11 }
 0x489   : > { %2282 = vrot.lane.b32.xlu2 %v2271_v12, %s2422_s12 }
 0x4bb   : > { %v2228_v45 = vpop.permute.xlu2 %2227 }
 0x4bc   : > { %v2230_v42 = vunpack.i.h.bf16 %v2228_v45  ;;  %v2229_v23 = vunpack.i.l.bf16 %v2228_v45 }
 0x4be   : > { %v1263_v17 = vsel %vm3828_vm1, %v2230_v42, %v3062_v2  ;;  %v1262_v45 = vsel %vm3829_vm4, %v2229_v23, %v2230_v42  ;;  %vm3832_vm4 = vcmask 785408   ;;  %vm3833_vm1 = vcmask 916480  }
 0x4c3   : > { %v3064_v62 = vpop.permute.xlu2 %2237 }
 0x4cb   : > { %v3068_v34 = vpop.permute.xlu2 %2247 }
 0x4d2   : > { %v2223_v58 = vpop.permute.xlu1 %2222  ;;  %v2233_v29 = vpop.permute.xlu0 %2232 }
 0x4d3   : > { %v2253_v21 = vpop.permute.xlu2 %2252  ;;  %v2224_v46 = vunpack.i.l.bf16 %v2223_v58 }
 0x4d4   : > { %v2255_v60 = vunpack.i.h.bf16 %v2253_v21  ;;  %v2254_v16 = vunpack.i.l.bf16 %v2253_v21  ;;  %v2235_v21 = vunpack.i.h.bf16 %v2233_v29 }
 0x4d6   : > { %v840_v3 = vsel %vm3826_vm8, %v3825_v59, %v2254_v16  ;;  %v841_v1 = vsel %vm3827_vm15, %v2254_v16, %v2255_v60  ;;  %v2240_v60 = vunpack.i.h.bf16 %v3064_v62  ;;  %v2239_v16 = vunpack.i.l.bf16 %v3064_v62 }
 0x4d7   : > { %v846_v12 = vsel %vm747_vm3, %v840_v3, 0.0  ;;  %v847_v32 = vsel %vm748_vm7, %v841_v1, 0.0  ;;  %v2250_v59 = vunpack.i.h.bf16 %v3068_v34  ;;  %v2234_v3 = vunpack.i.l.bf16 %v2233_v29 }
 0x4d8   : > { %v915_v15 = vpack.c.bf16 %v846_v12, %v846_v12  ;;  %v916_v36 = vpack.c.bf16 %v847_v32, %v847_v32  ;;  %vm3830_vm8 = vcmask 1041408   ;;  %v2249_v12 = vunpack.i.l.bf16 %v3068_v34 }
 0x4d9   : > { %vm3831_vm15 = vmmov %vm3830_vm8  ;;  %v2225_v32 = vunpack.i.h.bf16 %v2223_v58 }
 0x4da   : > { %v2258_v26 = vpop.permute.xlu0 %2257  ;;  %v930_v1 = vsel %vm3830_vm8, %v915_v15, 0  ;;  %v2243_v61 = vpop.permute.xlu1 %2242  ;;  %v933_v37 = vsel %vm3831_vm15, %v916_v36, 0  ;;  %v1292_v15 = vsel %vm3788_vm10, %v2235_v21, %v3066_v33  ;;  %v1239_v33 = vsel %vm3832_vm4, %v2239_v16, %v2240_v60  ;;  %vm3834_vm8 = vmmov %vm3832_vm4 }
 0x4db   : > { %v3096_v27 = vpop.permute.xlu2 %887  ;;  %953 = vmatpush.bf16.msra.mxu2 %v930_v1  ;;  %v2245_v42 = vunpack.i.h.bf16 %v2243_v61  ;;  %v2244_v35 = vunpack.i.l.bf16 %v2243_v61  ;;  %966 = vmatpush.bf16.msra.mxu3 %v933_v37  ;;  %v2260_v62 = vunpack.i.h.bf16 %v2258_v26  ;;  %v2259_v49 = vunpack.i.l.bf16 %v2258_v26  ;;  %vm3835_vm15 = vmmov %vm3833_vm1 }
 0x4dc   : > { %v3100_v29 = vsel %vm3792_vm9, %v2219_v20, %v3096_v27  ;;  %v1291_v37 = vsel %vm3788_vm10, %v2234_v3, %v2235_v21  ;;  %v3113_v26 = vsel %vm3794_vm12, 0.0, %v1221_v18  ;;  %vm3836_vm10 = vmmov %vm3832_vm4 }
 0x4dd   : > { %v1276_v36 = vsel %vm3792_vm9, %v2245_v42, %v2219_v20  ;;  %v1275_v34 = vsel %vm3792_vm9, %v2244_v35, %v2245_v42  ;;  %v1306_v43 = vsel %vm3794_vm12, %v2229_v23, %v2244_v35  ;;  %v1224_v20 = vsel %vm3833_vm1, %v2250_v59, %v1221_v18  ;;  %vm3837_vm4 = vmmov %vm3833_vm1 }
 0x4de   : > { %v1314_v1 = vpack.c.bf16 %v2234_v3, %v1306_v43  ;;  %v1308_v61 = vsel %vm3794_vm12, %v1263_v17, %v1276_v36  ;;  %v1307_v58 = vsel %vm3794_vm12, %v1262_v45, %v1275_v34  ;;  %v1237_v35 = vsel %vm3834_vm8, %v2224_v46, %v2225_v32 }
 0x4df   : > { %v1316_v0 = vpack.c.bf16 %v1292_v15, %v1308_v61  ;;  %v1315_v44 = vpack.c.bf16 %v1291_v37, %v1307_v58  ;;  %v1250_v43 = vsel %vm566_vm14, %v2259_v49, %v2260_v62  ;;  %v1223_v23 = vsel %vm3835_vm15, %v2249_v12, %v2250_v59 }
 0x4e0   : > { %1339 = vrot.lane.b32.xlu1 %v1314_v1, %s2421_s11  ;;  %v1238_v21 = vsel %vm3836_vm10, %v2225_v32, %v2239_v16  ;;  %v1222_v3 = vsel %vm3837_vm4, %v2638_v7, %v2249_v12  ;;  %v1302_v42 = vsel %vm3794_vm12, %v1237_v35, %v2259_v49  ;;  %v3838_v12 = vunpack.i.h.bf16 %v2823_v8  ;;  %vm3164_vm4 = vmneg %vm3794_vm12 }
 0x4e1   : > { %1343 = vrot.lane.b32.xlu0 %v1316_v0, %s2421_s11  ;;  %1341 = vrot.lane.b32.xlu2 %v1315_v44, %s2421_s11  ;;  %v2220_v0 = vunpack.i.h.bf16 %v3060_v13  ;;  %v1303_v59 = vsel %vm3794_vm12, %v1238_v21, %v1250_v43  ;;  %vm3839_vm10 = vcmask 1006592   ;;  %v1298_v32 = vsel %vm3794_vm12, 0.0, %v1222_v3 }
 0x4e2   : > { %v2263_v17 = vpop.permute.xlu0 %2262  ;;  %v1249_v45 = vpop.permute.xlu1 %1248  ;;  %vm3840_vm1 = vmmov %vm3839_vm10  ;;  %v1300_v34 = vsel %vm3794_vm12, %v3026_v11, %v1224_v20  ;;  %v1299_v1 = vsel %vm3794_vm12, %v3024_v9, %v1223_v23  ;;  %v3841_v11 = vunpack.i.h.bf16 %v2891_v51 }
 0x4e3   : > { %v2265_v18 = vunpack.i.h.bf16 %v2263_v17  ;;  %v2264_v15 = vunpack.i.l.bf16 %v2263_v17  ;;  %v1251_v46 = vsel %vm566_vm14, %v2260_v62, %v1249_v45  ;;  %v3127_v36 = vsel %vm3794_vm12, %v2240_v60, %v1249_v45  ;;  %v2283_v35 = vpop.permute.xlu2 %2282 }
 0x4e4   : > { %v1304_v44 = vsel %vm3794_vm12, %v1239_v33, %v1251_v46  ;;  %v1313_v16 = vpack.c.bf16 %v3127_v36, %v3113_v26  ;;  %v3139_v62 = vadd.s32 4294967291, %v2512_v30  ;;  %v3142_v60 = vadd.s32 4294967291, %v2709_v28 }
 0x4e5   : > { %v804_v49 = vsel %vm3839_vm10, %v3838_v12, %v2264_v15  ;;  %v805_v13 = vsel %vm3840_vm1, %v2264_v15, %v2265_v18  ;;  %v1310_v33 = vpack.c.bf16 %v1302_v42, %v1298_v32  ;;  %v1312_v61 = vpack.c.bf16 %v1304_v44, %v1300_v34 }
 0x4e6   : > { %v810_v8 = vsel %vm747_vm3, %v804_v49, 0.0  ;;  %v1311_v37 = vpack.c.bf16 %v1303_v59, %v1299_v1  ;;  %v811_v58 = vsel %vm748_vm7, %v805_v13, 0.0  ;;  %v891_v20 = vsel %vm3792_vm9, %v3841_v11, %v2220_v0 }
 0x4e7   : > { %v876_v9 = vrot.slane %v810_v8, 4  ;;  %vm705_vm8 = vcmp.ge.s32.totalorder %v3139_v62, 0  ;;  %vm706_vm15 = vcmp.ge.s32.totalorder %v3142_v60, 0  ;;  %v892_v42 = vsel %vm3792_vm9, %v2220_v0, %v3096_v27  ;;  %v3179_v27 = vld [vmem:[%s3738_s1 + $0x30] sm:$0xf] }
 0x4e8   : > { %1331 = vrot.lane.b32.xlu1 %v1310_v33, %s2421_s11  ;;  %v877_v18 = vrot.slane %v811_v58, 4  ;;  %v2285_v15 = vunpack.i.h.bf16 %v2283_v35  ;;  %v3844_v46 = vunpack.i.h.bf16 %v2825_v14  ;;  %v3845_v12 = vunpack.i.h.bf16 %v2838_v54 }
 0x4e9   : > { %1335 = vrot.lane.b32.xlu0 %v1312_v61, %s2421_s11  ;;  %1333 = vrot.lane.b32.xlu2 %v1311_v37, %s2421_s11  ;;  %v2284_v0 = vunpack.i.l.bf16 %v2283_v35  ;;  %v903_v33 = vsel %vm3794_vm12, %v2770_v53, %v876_v9  ;;  %v3848_v58 = vunpack.i.h.bf16 %v2827_v38  ;;  %vm3855_vm10 = vcmask 15360  }
 0x4ea   : > { %v2273_v43 = vpop.permute.xlu0 %2272  ;;  %v2268_v23 = vpop.permute.xlu1 %2267  ;;  %vm3857_vm1 = vcmask 7168  }
 0x4eb   : > { %v2275_v21 = vunpack.i.h.bf16 %v2273_v43  ;;  %v2274_v17 = vunpack.i.l.bf16 %v2273_v43  ;;  %v2270_v45 = vunpack.i.h.bf16 %v2268_v23  ;;  %v2269_v3 = vunpack.i.l.bf16 %v2268_v23 }
 0x4ec   : > { %v768_v35 = vsel %vm766_vm0, %v3848_v58, %v2284_v0  ;;  %v769_v11 = vsel %vm766_vm0, %v2284_v0, %v2285_v15 }
 0x4ed   : > { %v786_v44 = vsel %vm784_vm11, %v3844_v46, %v2274_v17  ;;  %v787_v59 = vsel %vm784_vm11, %v2274_v17, %v2275_v21  ;;  %v822_v49 = vsel %vm820_vm6, %v3845_v12, %v2269_v3  ;;  %v823_v32 = vsel %vm820_vm6, %v2269_v3, %v2270_v45 }
 0x4ee   : > { %v829_v13 = vsel %vm706_vm15, %v823_v32, 0.0  ;;  %v828_v14 = vsel %vm705_vm8, %v822_v49, 0.0  ;;  %v792_v54 = vsel %vm705_vm8, %v786_v44, 0.0  ;;  %v793_v34 = vsel %vm706_vm15, %v787_v59, 0.0 }
 0x4ef   : > { %v906_v1 = vsel %vm3794_vm12, %v828_v14, %v891_v20  ;;  %v907_v8 = vsel %vm3794_vm12, %v829_v13, %v892_v42  ;;  %vm3789_vm11 = vmmov 1   ;;  %v867_v20 = vrot.slane %v792_v54, 4 }
 0x4f0   : > { %vm3196_vm6 = vmpackc.low %vm3789_vm11, %vm3164_vm4  ;;  %1320 = vperm.xlu1 %2215, %v3179_v27   ;;  %v912_v53 = vpack.c.bf16 %v906_v1, %v903_v33  ;;  %v1995_v37 = vpack.c.bf16 %v907_v8, %v877_v18  ;;  %v868_v9 = vrot.slane %v793_v34, 4  ;;  %v3849_v18 = vunpack.i.h.bf16 %v2854_v63 }
 0x4f1   : > { %1022 = vrot.lane.b32.xlu0 %v2778_v56, %s2407_s19  ;;  %1102 = vrot.lane.b32.xlu2 %v3807_v48, %s2423_s14  ;;  %v774_v59 = vsel %vm747_vm3, %v768_v35, 0.0  ;;  %v1080_v13 = vadd.s32 3, %v2709_v28  ;;  %s2426_s19 = smov 23  }
 0x4f2   : > { %v2288_v43 = vpop.permute.xlu0 %2287  ;;  %v2278_v23 = vpop.permute.xlu1 %2277  ;;  %954 = vmatpush.bf16.msra.mxu2 %v912_v53  ;;  %1996 = vmatpush.bf16.msk.msra.mxu3 %vm3196_vm6, %v1995_v37  ;;  %v900_v63 = vsel %vm3794_vm12, %v774_v59, %v867_v20 }
 0x4f3   : > { %v2290_v21 = vunpack.i.h.bf16 %v2288_v43  ;;  %v2289_v17 = vunpack.i.l.bf16 %v2288_v43  ;;  %v2280_v45 = vunpack.i.h.bf16 %v2278_v23  ;;  %v2279_v3 = vunpack.i.l.bf16 %v2278_v23 }
 0x4f4   : > { %vm1086_vm0 = vcmp.lt.s32.totalorder %v1080_v13, 16  ;;  %v3313_v13 = vld [vmem:[%s3738_s1 + $0x38] sm:$0xf] }
 0x4f5   : > { %v858_v42 = vsel %vm566_vm14, %v2900_v39, %v2289_v17  ;;  %v859_v38 = vsel %vm566_vm14, %v2289_v17, %v2290_v21  ;;  %v732_v15 = vsel %vm730_vm13, %v3849_v18, %v2279_v3  ;;  %v733_v46 = vsel %vm730_vm13, %v2279_v3, %v2280_v45 }
 0x4f6   : > { %v738_v44 = vsel %vm705_vm8, %v732_v15, 0.0  ;;  %v739_v12 = vsel %vm706_vm15, %v733_v46, 0.0  ;;  %v775_v39 = vsel %vm748_vm7, %v769_v11, 0.0  ;;  %vm3850_vm13 = vcmask 1022976  }
 0x4f7   : > { %v897_v49 = vsel %vm3794_vm12, %v738_v44, %v858_v42  ;;  %v898_v32 = vsel %vm3794_vm12, %v739_v12, %v859_v38  ;;  %v901_v0 = vsel %vm3794_vm12, %v775_v39, %v868_v9  ;;  %vm3851_vm14 = vcmask 1045504  }
 0x4f8   : > { %1006 = vrot.lane.b32.xlu1 %v2778_v56, %s2424_s15  ;;  %v909_v62 = vpack.c.bf16 %v900_v63, %v897_v49  ;;  %v910_v19 = vpack.c.bf16 %v901_v0, %v898_v32  ;;  %vm3852_vm3 = vmmov %vm3851_vm14  ;;  %v984_v17 = vadd.s32 4294967293, %v2709_v28  ;;  %v3856_v45 = vunpack.i.h.bf16 %v2970_v10 }
 0x4f9   : > { %1037 = vrot.lane.b32.xlu2 %v2778_v56, %s2408_s20  ;;  %vm3853_vm7 = vmmov %vm3852_vm3  ;;  %vm3858_vm8 = vcmp.ge.s32.totalorder %v2741_v55, 0 }
 0x4fa   : > { %955 = vmatpush.bf16.msra.mxu2 %v909_v62  ;;  %968 = vmatpush.bf16.msra.mxu3 %v910_v19  ;;  %vm987_vm15 = vcmp.ge.s32.totalorder %v984_v17, 0 }
 0x4fd   : > { %1997 = vmatmul.msk.bf16.vlgmr.msra.gmra.mxu3 %vm3793_vm2, %v2942_v4  ;;  %1992 = vmatmul.msk.bf16.vlgmr.msra.gmra.mxu2 %vm3793_vm2, %v2942_v4 }
 0x53b   : > { %v1342_v41 = vpop.permute.xlu2 %1341 }
 0x543   : > { %v1334_v60 = vpop.permute.xlu2 %1333 }
 0x54b   : > { %v1103_v14 = vpop.permute.xlu2 %1102 }
 0x54c   : > { %v1107_v33 = vsel %vm3850_vm13, %v2962_v22, %v1103_v14  ;;  %vm3860_vm13 = vcmask 23552   ;;  %v3321_v14 = vsel %vm3794_vm12, 0.0, %v2613_v40 }
 0x54d   : > { %v1113_v54 = vsel %vm1086_vm0, %v1107_v33, 0.0  ;;  %vm3859_vm0 = vcmp.ge.s32.totalorder %v2727_v47, 0  ;;  %v2331_v33 = vpack.i.bf16 0.0, %v3321_v14 }
 0x54e   : > { %v1146_v56 = vpack.c.bf16 %v1113_v54, %v2883_v5  ;;  %v3252_v5 = vpack.c.bf16 %v3179_v27, %v3179_v27  ;;  %v3854_v27 = vunpack.i.h.bf16 %v2934_v57  ;;  %v3346_v54 = vadd.s32 7, %v2512_v30 }
 0x550   : > { %v1164_v34 = vsel %vm3851_vm14, %v1146_v56, 0  ;;  %vm1514_vm14 = vcmask 990208  }
 0x551   : > { %1198 = vmatpush.bf16.msrb.mxu2 %v1164_v34 }
 0x552   : > { %v1340_v1 = vpop.permute.xlu1 %1339 }
 0x553   : > { %v1351_v8 = vsel %vm3792_vm9, %v1340_v1, %v1342_v41  ;;  %v3244_v53 = vpop.permute.xlu0 %1343  ;;  %v1038_v23 = vpop.permute.xlu2 %1037 }
 0x554   : > { %v1361_v4 = vsel %vm3852_vm3, %v1351_v8, 0  ;;  %v1352_v37 = vsel %vm3792_vm9, %v1342_v41, %v3244_v53  ;;  %v1041_v3 = vsel %vm3857_vm1, %v3856_v45, %v1038_v23  ;;  %vm1550_vm3 = vcmask 72704  }
 0x555   : > { %v1364_v58 = vsel %vm3853_vm7, %v1352_v37, 0  ;;  %1375 = vmatpush.bf16.msrb.mxu3 %v1361_v4  ;;  %v1047_v38 = vsel %vm3859_vm0, %v1041_v3, 0.0  ;;  %vm1459_vm7 = vcmp.lt.s32.totalorder %v3346_v54, 16  ;;  %v1414_v23 = vadd.s32 4294967289, %v2512_v30 }
 0x556   : > { %1388 = vmatpush.bf16.msra.mxu0 %v1364_v58  ;;  %v1137_v10 = vsel %vm3794_vm12, %v1047_v38, %v2488_v24  ;;  %vm3861_vm1 = vcmask 1041408   ;;  %vm1496_vm0 = vcmask 56320  }
 0x55a   : > { %v1332_v22 = vpop.permute.xlu1 %1331 }
 0x55b   : > { %v3254_v35 = vpop.permute.xlu0 %1335  ;;  %v1348_v11 = vsel %vm3792_vm9, %v1332_v22, %v1334_v60 }
 0x55c   : > { %1376 = vmatpush.bf16.msrb.mxu3 %v1348_v11  ;;  %v1349_v20 = vsel %vm3792_vm9, %v1334_v60, %v3254_v35  ;;  %vm3865_vm9 = vcmask 916480  }
 0x55d   : > { %1389 = vmatpush.bf16.msra.mxu0 %v1349_v20 }
 0x55f   : > { %2001 = vmatmul.msk.bf16.vlgmr.msrb.gmra.mxu3 %vm3791_vm5, %v3252_v5 }
 0x560   : > { %2002 = vmatmul.msk.bf16.vlgmr.msra.gmra.mxu0 %vm3791_vm5, %v3252_v5 }
 0x562   : > { %v1321_v9 = vpop.permute.xlu1 %1320 }
 0x563   : > { %v1023_v43 = vpop.permute.xlu0 %1022 }
 0x564   : > { %v1026_v21 = vsel %vm3855_vm10, %v3854_v27, %v1023_v43  ;;  %vm1532_vm10 = vcmask 187392  }
 0x565   : > { %v1032_v42 = vsel %vm3858_vm8, %v1026_v21, 0.0  ;;  %vm1601_vm8 = vcmask 130048  }
 0x566   : > { %v1119_v15 = vrot.slane %v1032_v42, 4 }
 0x56a   : > { %v1007_v18 = vpop.permute.xlu1 %1006 }
 0x56b   : > { %v1011_v57 = vsel %vm3860_vm13, %v2999_v6, %v1007_v18  ;;  %vm3796_vm13 = vcmask 973824  }
 0x56c   : > { %v1017_v46 = vsel %vm987_vm15, %v1011_v57, 0.0  ;;  %vm1417_vm15 = vcmp.ge.s32.totalorder %v1414_v23, 0 }
 0x56d   : > { %v1134_v44 = vsel %vm3794_vm12, %v1017_v46, %v1119_v15 }
 0x56e   : > { %v1143_v59 = vpack.c.bf16 %v1137_v10, %v1134_v44  ;;  %v3393_v10 = vadd.s32 7, %v2515_v31 }
 0x570   : > { %1199 = vmatpush.bf16.msrb.mxu2 %v1143_v59  ;;  %vm1458_vm11 = vcmp.lt.s32.totalorder %v3393_v10, 16  ;;  %v3511_v10 = vadd.s32 4294967289, %v2709_v28 }
 0x573   : > { %2000 = vmatmul.msk.bf16.vlgmr.msrb.gmra.mxu2 %vm3791_vm5, %v3016_v50  ;;  %vm1478_vm5 = vcmask 859136  }
 0x580   : > { %v970_v55 = vpop.f32.mrf.mxu3  ;;  %v3374_v17 = vpop.f32.mrf.mxu2 }
 0x588   : > { %v972_v12 = vpop.f32.mrf.mxu3 }
 0x5dd   : > { %v1391_v39 = vpop.f32.mrf.mxu0 }
 0x5de   : > { %v3281_v49 = vadd.f32 %v1391_v39, %v1321_v9 }
 0x5e0   : > { %v2301_v63 = vpack.i.bf16 0.0, %v3281_v49  ;;  %v1561_v32 = vrot.slane %v3281_v49, 4 }
 0x5e2   : > { %2302 = vrot.lane.b32.xlu2 %v2301_v63, %s2426_s19  ;;  %2297 = vrot.lane.b32.xlu1 %v2301_v63, %s2427_s25  ;;  %v1378_v6 = vpop.f32.mrf.mxu3  ;;  %v2306_v62 = vpack.i.bf16 %v2613_v40, %v1561_v32 }
 0x5e3   : > { %2292 = vrot.lane.b32.xlu0 %v2301_v63, %s2428_s26  ;;  %v3287_v24 = vadd.f32 %v1378_v6, %v1321_v9 }
 0x5e5   : > { %v1393_v50 = vpop.f32.mrf.mxu0  ;;  %v2316_v0 = vpack.i.bf16 %v3281_v49, %v3287_v24  ;;  %v1560_v41 = vrot.slane %v3287_v24, 4 }
 0x5e7   : > { %v2326_v60 = vpack.i.bf16 %v1561_v32, %v1560_v41 }
 0x5ea   : > { %2317 = vrot.lane.b32.xlu2 %v2316_v0, %s2429_s28  ;;  %2312 = vrot.lane.b32.xlu1 %v2316_v0, %s2430_s30  ;;  %v1380_v19 = vpop.f32.mrf.mxu3 }
 0x5eb   : > { %2307 = vrot.lane.b32.xlu0 %v2306_v62, %s2431_s3 }
 0x5f2   : > { %1542 = vrot.lane.b32.xlu1 %v3287_v24, %s2428_s26  ;;  %2327 = vrot.lane.b32.xlu2 %v2326_v60, %s2413_s27 }
 0x5f3   : > { %2322 = vrot.lane.b32.xlu0 %v2316_v0, %s2432_s4  ;;  %v959_v0 = vpop.f32.mrf.mxu2 }
 0x5fa   : > { %1524 = vrot.lane.b32.xlu1 %v3287_v24, %s2426_s19  ;;  %1593 = vrot.lane.b32.xlu2 %v1560_v41, %s2431_s3 }
 0x5fb   : > { %1506 = vrot.lane.b32.xlu0 %v3287_v24, %s2427_s25 }
 0x602   : > { %1434 = vrot.lane.b32.xlu1 %v3807_v48, %s2429_s28  ;;  %1470 = vrot.lane.b32.xlu2 %v3807_v48, %s2432_s4 }
 0x603   : > { %1488 = vrot.lane.b32.xlu0 %v3807_v48, %s2430_s30 }
 0x60a   : > { %919 = vperm.xlu1 %2215, %v2929_v52   ;;  %1288 = vrot.lane.b32.xlu2 %v3807_v48, %s2415_s29  ;;  %v2336_v52 = vpack.i.bf16 %v2613_v40, %v3321_v14  ;;  %s2434_s29 = smov 17  }
 0x60b   : > { %1631 = vperm.xlu0 %2094, %v3313_v13  }
 0x612   : > { %1337 = vrot.lane.b32.xlu2 %v1313_v16, %s2421_s11 }
 0x613   : > { %2332 = vrot.lane.b32.xlu0 %v2331_v33, %s2433_s7 }
 0x61a   : > { %1548 = vrot.lane.b32.xlu2 %v3807_v48, %s2428_s26 }
 0x61b   : > { %1530 = vrot.lane.b32.xlu0 %v3807_v48, %s2426_s19 }
 0x622   : > { %1512 = vrot.lane.b32.xlu2 %v3807_v48, %s2427_s25 }
 0x623   : > { %1494 = vrot.lane.b32.xlu0 %v3807_v48, %s2430_s30 }
 0x62a   : > { %2337 = vrot.lane.b32.xlu2 %v2336_v52, %s2431_s3 }
 0x63c   : > { %v3339_v26 = vpop.permute.xlu2 %2302 }
 0x63d   : > { %v2305_v20 = vunpack.i.h.bf16 %v3339_v26  ;;  %v2304_v9 = vunpack.i.l.bf16 %v3339_v26 }
 0x63f   : > { %v1534_v38 = vsel %vm1532_vm10, %v2304_v9, %v2305_v20 }
 0x640   : > { %v1540_v55 = vsel %vm1417_vm15, %v1534_v38, 0.0 }
 0x644   : > { %v3341_v36 = vpop.permute.xlu2 %2317 }
 0x645   : > { %v2320_v12 = vunpack.i.h.bf16 %v3341_v36  ;;  %v2319_v39 = vunpack.i.l.bf16 %v3341_v36 }
 0x647   : > { %v1444_v52 = vsel %vm3796_vm13, %v2319_v39, %v2320_v12 }
 0x64c   : > { %v3343_v16 = vpop.permute.xlu2 %2327 }
 0x64d   : > { %v2330_v19 = vunpack.i.h.bf16 %v3343_v16  ;;  %v2329_v41 = vunpack.i.l.bf16 %v3343_v16 }
 0x64f   : > { %v1570_v38 = vsel %vm3865_vm9, %v2329_v41, %v2330_v19 }
 0x654   : > { %v3348_v56 = vpop.permute.xlu1 %2297  ;;  %v3350_v34 = vpop.permute.xlu2 %1593 }
 0x655   : > { %v2300_v1 = vunpack.i.h.bf16 %v3348_v56  ;;  %v2299_v8 = vunpack.i.l.bf16 %v3348_v56  ;;  %v3354_v4 = vpop.permute.xlu0 %2292 }
 0x656   : > { %v2295_v37 = vunpack.i.h.bf16 %v3354_v4  ;;  %v2294_v58 = vunpack.i.l.bf16 %v3354_v4 }
 0x657   : > { %v1516_v22 = vsel %vm1514_vm14, %v2299_v8, %v2300_v1 }
 0x658   : > { %v1552_v11 = vsel %vm1550_vm3, %v2294_v58, %v2295_v37  ;;  %v1522_v27 = vsel %vm1459_vm7, %v1516_v22, 0.0 }
 0x659   : > { %v1558_v43 = vsel %vm1459_vm7, %v1552_v11, 0.0  ;;  %v1588_v30 = vrot.slane %v1522_v27, 4  ;;  %v3863_v11 = vld [vmem:[#allocation13_spill] sm:$0xff] }
 0x65a   : > { %v1627_v21 = vpack.c.bf16 %v1558_v43, %v1558_v43 }
 0x65b   : > { %v1615_v63 = vsel %vm3794_vm12, %v3281_v49, %v1588_v30 }
 0x65c   : > { %v1641_v45 = vsel %vm3861_vm1, %v1627_v21, 0  ;;  %v3377_v3 = vpop.permute.xlu1 %2312  ;;  %v3379_v42 = vpop.permute.xlu2 %1470  ;;  %vm3862_vm1 = vcmask 523264  }
 0x65d   : > { %v3386_v18 = vpop.permute.xlu0 %2307  ;;  %1664 = vmatpush.bf16.msra.mxu3 %v1641_v45  ;;  %v2315_v46 = vunpack.i.h.bf16 %v3377_v3  ;;  %v2314_v44 = vunpack.i.l.bf16 %v3377_v3  ;;  %v1264_v62 = vsel %vm3862_vm1, %v3062_v2, %v2707_v25  ;;  %vm3864_vm1 = vcmask 261120  }
 0x65e   : > { %v2310_v15 = vunpack.i.h.bf16 %v3386_v18  ;;  %v2309_v57 = vunpack.i.l.bf16 %v3386_v18  ;;  %v1309_v60 = vsel %vm3794_vm12, %v1264_v62, %v3100_v29  ;;  %v1201_v62 = vpop.f32.mrf.mxu2 }
 0x65f   : > { %v1498_v50 = vsel %vm1496_vm0, %v2314_v44, %v2315_v46 }
 0x660   : > { %v1603_v59 = vsel %vm1601_vm8, %v2309_v57, %v2310_v15  ;;  %v1504_v25 = vsel %vm1417_vm15, %v1498_v50, 0.0 }
 0x661   : > { %v1618_v6 = vsel %vm3794_vm12, %v1540_v55, %v1603_v59  ;;  %v1579_v59 = vrot.slane %v1504_v25, 4  ;;  %v1413_v55 = vadd.s32 4294967289, %v2515_v31 }
 0x662   : > { %v1624_v32 = vpack.c.bf16 %v1618_v6, %v1615_v63  ;;  %v1450_v6 = vsel %vm1417_vm15, %v1444_v52, 0.0 }
 0x663   : > { %vm1416_vm9 = vcmp.ge.s32.totalorder %v1413_v55, 0 }
 0x664   : > { %1665 = vmatpush.bf16.msra.mxu3 %v1624_v32  ;;  %v1543_v49 = vpop.permute.xlu1 %1542  ;;  %v1289_v33 = vpop.permute.xlu2 %1288  ;;  %v1609_v32 = vsel %vm3794_vm12, %v1450_v6, %v1570_v38 }
 0x665   : > { %v3423_v2 = vpop.permute.xlu0 %2322  ;;  %v1551_v22 = vsel %vm1550_vm3, %v1543_v49, %v2294_v58  ;;  %v1293_v43 = vsel %vm3864_vm1, %v3863_v11, %v1289_v33  ;;  %vm3866_vm1 = vcmask 1041408  }
 0x666   : > { %v2325_v27 = vunpack.i.h.bf16 %v3423_v2  ;;  %v2324_v29 = vunpack.i.l.bf16 %v3423_v2  ;;  %v1557_v21 = vsel %vm1458_vm11, %v1551_v22, 0.0  ;;  %v1317_v45 = vpack.c.bf16 %v1293_v43, %v1309_v60  ;;  %vm3868_vm15 = vmmov %vm3866_vm1 }
 0x667   : > { %v1626_v30 = vpack.c.bf16 %v1557_v21, %v1557_v21  ;;  %v3450_v60 = vpack.c.bf16 %v3313_v13, %v3313_v13  ;;  %v3464_v22 = vadd.s32 7, %v2709_v28  ;;  %v1203_v21 = vpop.f32.mrf.mxu2 }
 0x668   : > { %v1480_v58 = vsel %vm1478_vm5, %v2324_v29, %v2325_v27  ;;  %1345 = vrot.lane.b32.xlu1 %v1317_v45, %s2421_s11  ;;  %s2436_s11 = smov 111  }
 0x669   : > { %v1638_v63 = vsel %vm3866_vm1, %v1626_v30, 0  ;;  %v1486_v50 = vsel %vm1459_vm7, %v1480_v58, 0.0  ;;  %vm3795_vm7 = vcmp.lt.s32.totalorder %v3464_v22, 16 }
 0x66a   : > { %1651 = vmatpush.bf16.msra.mxu2 %v1638_v63  ;;  %v1612_v0 = vsel %vm3794_vm12, %v1486_v50, %v1579_v59 }
 0x66b   : > { %v1621_v49 = vpack.c.bf16 %v1612_v0, %v1609_v32 }
 0x66c   : > { %v1525_v31 = vpop.permute.xlu1 %1524  ;;  %v3452_v33 = vpop.permute.xlu2 %1337 }
 0x66d   : > { %v1507_v23 = vpop.permute.xlu0 %1506  ;;  %v1533_v54 = vsel %vm1532_vm10, %v1525_v31, %v2304_v9  ;;  %1666 = vmatpush.bf16.msra.mxu3 %v1621_v49  ;;  %v1602_v9 = vsel %vm1601_vm8, %v3350_v34, %v2309_v57 }
 0x66e   : > { %v1515_v52 = vsel %vm1514_vm14, %v1507_v23, %v2299_v8  ;;  %v1539_v13 = vsel %vm1416_vm9, %v1533_v54, 0.0 }
 0x66f   : > { %v1521_v25 = vsel %vm1458_vm11, %v1515_v52, 0.0  ;;  %v1617_v43 = vsel %vm3794_vm12, %v1539_v13, %v1602_v9 }
 0x670   : > { %v1587_v11 = vrot.slane %v1521_v25, 4  ;;  %2005 = vmatmul.msk.bf16.vlgmr.msra.gmra.mxu3 %vm3793_vm2, %v3450_v60  ;;  %1745 = vrot.lane.b32.xlu1 %v3321_v14, %s2408_s20 }
 0x672   : > { %v1614_v8 = vsel %vm3794_vm12, %v3287_v24, %v1587_v11  ;;  %v1479_v24 = vsel %vm1478_vm5, %v3379_v42, %v2324_v29 }
 0x673   : > { %v1623_v45 = vpack.c.bf16 %v1617_v43, %v1614_v8  ;;  %v1485_v42 = vsel %vm1458_vm11, %v1479_v24, 0.0  ;;  %vm1418_vm11 = vcmp.ge.s32.totalorder %v3511_v10, 0  ;;  %v2396_v24 = vld [vmem:[%s3738_s1 + $0x8] sm:$0xf] }
 0x674   : > { %v1435_v38 = vpop.permute.xlu1 %1434  ;;  %v1549_v30 = vpop.permute.xlu2 %1548 }
 0x675   : > { %v1489_v59 = vpop.permute.xlu0 %1488  ;;  %v1443_v58 = vsel %vm3796_vm13, %v1435_v38, %v2319_v39  ;;  %v1553_v34 = vsel %vm1550_vm3, %v2295_v37, %v1549_v30  ;;  %1652 = vmatpush.bf16.msra.mxu2 %v1623_v45  ;;  %vm3867_vm3 = vcmask 916480   ;;  %vm1713_vm13 = vcmask 138240  }
 0x676   : > { %v1497_v57 = vsel %vm1496_vm0, %v1489_v59, %v2314_v44  ;;  %v1559_v63 = vsel %vm3795_vm7, %v1553_v34, 0.0  ;;  %v1449_v50 = vsel %vm1416_vm9, %v1443_v58, 0.0  ;;  %v1569_v4 = vsel %vm3867_vm3, %v2638_v7, %v2329_v41  ;;  %v3578_v34 = vld [vmem:[%s3738_s1 + $0x40] sm:$0xf] }
 0x677   : > { %v1503_v6 = vsel %vm1416_vm9, %v1497_v57, 0.0  ;;  %v1628_v39 = vpack.c.bf16 %v1559_v63, %v1559_v63  ;;  %v1608_v44 = vsel %vm3794_vm12, %v1449_v50, %v1569_v4  ;;  %vm1779_vm3 = vcmask 924672  }
 0x678   : > { %v1578_v32 = vrot.slane %v1503_v6, 4  ;;  %1711 = vrot.lane.b32.xlu1 %v3321_v14, %s2434_s29 }
 0x679   : > { %v1644_v37 = vsel %vm3868_vm15, %v1628_v39, 0  ;;  %vm3876_vm15 = vcmask 916480  }
 0x67a   : > { %1677 = vmatpush.bf16.msrb.mxu0 %v1644_v37  ;;  %v1611_v29 = vsel %vm3794_vm12, %v1485_v42, %v1578_v32 }
 0x67b   : > { %v1620_v55 = vpack.c.bf16 %v1611_v29, %v1608_v44  ;;  %v3874_v44 = vld [vmem:[#allocation6_spill] sm:$0xff] }
 0x67c   : > { %v1513_v62 = vpop.permute.xlu2 %1512  ;;  %vm3875_vm9 = vcmp.lt.s32.totalorder %v3874_v44, 16 }
 0x67d   : > { %v1632_v0 = vpop.permute.xlu0 %1631  ;;  %1653 = vmatpush.bf16.msra.mxu2 %v1620_v55  ;;  %v1517_v49 = vsel %vm1514_vm14, %v2300_v1, %v1513_v62  ;;  %vm3869_vm14 = vcmask 392192  }
 0x67e   : > { %v1523_v23 = vsel %vm3795_vm7, %v1517_v49, 0.0  ;;  %vm3871_vm1 = vmmov %vm3869_vm14  ;;  %vm3902_vm7 = vcmask 7168  }
 0x67f   : > { %v1589_v25 = vrot.slane %v1523_v23, 4  ;;  %v1350_v8 = vsel %vm3871_vm1, %v3254_v35, %v3452_v33  ;;  %v3873_v33 = vld [vmem:[#allocation12_spill] sm:$0xff] }
 0x680   : > { %2004 = vmatmul.msk.bf16.vlgmr.msra.gmra.mxu2 %vm3793_vm2, %v3450_v60  ;;  %1440 = vrot.lane.b32.xlu1 %v3807_v48, %s2429_s28 }
 0x684   : > { %v3508_v41 = vpop.permute.xlu2 %2337 }
 0x685   : > { %v3506_v7 = vpop.permute.xlu0 %2332  ;;  %v2340_v31 = vunpack.i.h.bf16 %v3508_v41 }
 0x687   : > { %v1604_v28 = vsel %vm1601_vm8, %v2310_v15, %v2340_v31 }
 0x68d   : > { %v1531_v54 = vpop.permute.xlu0 %1530 }
 0x68e   : > { %v1535_v52 = vsel %vm1532_vm10, %v2305_v20, %v1531_v54  ;;  %v920_v20 = vpop.permute.xlu1 %919  ;;  %vm3870_vm10 = vcmask 1045504  }
 0x68f   : > { %v1541_v56 = vsel %vm1418_vm11, %v1535_v52, 0.0 }
 0x690   : > { %v1619_v1 = vsel %vm3794_vm12, %v1541_v56, %v1604_v28 }
 0x691   : > { %v2008_v13 = vpack.c.bf16 %v1619_v1, %v1589_v25 }
 0x693   : > { %2009 = vmatpush.bf16.msk.msrb.mxu0 %vm3196_vm6, %v2008_v13  ;;  %vm3872_vm6 = vcmask 228352  }
 0x695   : > { %v1495_v11 = vpop.permute.xlu0 %1494 }
 0x696   : > { %v3534_v26 = vsel %vm1496_vm0, %v2315_v46, %v1495_v11  ;;  %v958_v46 = vadd.f32 %v3374_v17, %v920_v20  ;;  %v945_v17 = vadd.f32 %v3873_v33, %v920_v20  ;;  %vm1797_vm0 = vcmask 908288   ;;  %v3877_v11 = vld [vmem:[#allocation4_spill] sm:$0xff]  ;;  %v3883_v33 = vld [vmem:[#allocation5_spill] sm:$0xff] }
 0x6da   : > { %v1346_v9 = vpop.permute.xlu1 %1345 }
 0x6db   : > { %v1353_v18 = vsel %vm3869_vm14, %v3244_v53, %v1346_v9  ;;  %vm3878_vm14 = vcmp.ge.s32.totalorder %v3877_v11, 0 }
 0x6dc   : > { %v1367_v15 = vsel %vm3870_vm10, %v1353_v18, 0  ;;  %vm3879_vm10 = vmmov 1  }
 0x6dd   : > { %1401 = vmatpush.bf16.msra.mxu1 %v1367_v15  ;;  %vm3603_vm1 = vmpackc.low %vm3879_vm10, %vm3878_vm14  ;;  %vm3884_vm14 = vcmp.lt.s32.totalorder %v3883_v33, 16 }
 0x6e1   : > { %1402 = vmatpush.bf16.msra.mxu1 %v1350_v8 }
 0x6e2   : > { %v3584_v57 = vpop.permute.xlu1 %1745 }
 0x6e4   : > { %2003 = vmatmul.msk.bf16.vlgmr.msra.gmra.mxu1 %vm3872_vm6, %v3252_v5  ;;  %vm3882_vm6 = vcmask 1039360  }
 0x6ea   : > { %v3586_v6 = vpop.permute.xlu1 %1711 }
 0x6f2   : > { %v3588_v50 = vpop.permute.xlu1 %1440 }
 0x6f3   : > { %v1668_v61 = vpop.f32.mrf.mxu3 }
 0x6f4   : > { %v1669_v3 = vadd.f32 %v1668_v61, %v1632_v0 }
 0x6f6   : > { %v1692_v43 = vrot.slane %v1669_v3, 4 }
 0x6f8   : > { %v3546_v21 = vsel %vm3794_vm12, %v958_v46, %v1692_v43 }
 0x6f9   : > { %v2356_v53 = vpack.i.bf16 %v3321_v14, %v3546_v21 }
 0x6fb   : > { %v1670_v45 = vpop.f32.mrf.mxu3  ;;  %2357 = vrot.lane.b32.xlu1 %v2356_v53, %s2410_s22  ;;  %2347 = vrot.lane.b32.xlu2 %v2356_v53, %s2435_s8 }
 0x6fc   : > { %2342 = vrot.lane.b32.xlu0 %v2356_v53, %s2436_s11 }
 0x703   : > { %v1655_v35 = vpop.f32.mrf.mxu2 }
 0x704   : > { %2352 = vrot.lane.b32.xlu0 %v2356_v53, %s2413_s27  ;;  %v1656_v5 = vadd.f32 %v1655_v35, %v1632_v0 }
 0x706   : > { %v1691_v38 = vrot.slane %v1656_v5, 4 }
 0x708   : > { %v3554_v30 = vsel %vm3794_vm12, %v945_v17, %v1691_v38  ;;  %v3885_v38 = vld [vmem:[#allocation9_spill] sm:$0xff] }
 0x709   : > { %v2371_v14 = vpack.i.bf16 %v3554_v30, %v3807_v48  ;;  %v2381_v58 = vpack.i.bf16 %v3546_v21, %v3554_v30 }
 0x70b   : > { %v1657_v59 = vpop.f32.mrf.mxu2  ;;  %2367 = vrot.lane.b32.xlu2 %v2371_v14, %s2435_s8  ;;  %2362 = vrot.lane.b32.xlu1 %v2371_v14, %s2436_s11 }
 0x70c   : > { %2372 = vrot.lane.b32.xlu0 %v2371_v14, %s2413_s27 }
 0x713   : > { %1476 = vrot.lane.b32.xlu2 %v3807_v48, %s2432_s4  ;;  %2382 = vrot.lane.b32.xlu1 %v2381_v58, %s2408_s20 }
 0x714   : > { %2377 = vrot.lane.b32.xlu0 %v2381_v58, %s2433_s7 }
 0x71b   : > { %2387 = vrot.lane.b32.xlu2 %v2381_v58, %s2434_s29  ;;  %2392 = vrot.lane.b32.xlu1 %v2381_v58, %s2431_s3 }
 0x71c   : > { %1756 = vrot.lane.b32.xlu0 %v3554_v30, %s2410_s22 }
 0x723   : > { %1705 = vrot.lane.b32.xlu1 %v3807_v48, %s2434_s29  ;;  %1807 = vrot.lane.b32.xlu2 %v3807_v48, %s2431_s3 }
 0x724   : > { %1567 = vrot.lane.b32.xlu0 %v2613_v40, %s2413_s27 }
 0x72b   : > { %1852 = vperm.xlu1 %2215, %v3578_v34  }
 0x72c   : > { %220 = vperm.xlu0 %2094, %v2396_v24  }
 0x755   : > { %v2348_v39 = vpop.permute.xlu2 %2347 }
 0x756   : > { %v2350_v62 = vunpack.i.h.bf16 %v2348_v39  ;;  %v2349_v49 = vunpack.i.l.bf16 %v2348_v39 }
 0x758   : > { %v1781_v1 = vsel %vm1779_vm3, %v2349_v49, %v2350_v62 }
 0x761   : > { %v1404_v63 = vpop.f32.mrf.mxu1 }
 0x765   : > { %v2368_v31 = vpop.permute.xlu2 %2367 }
 0x766   : > { %v2370_v59 = vunpack.i.h.bf16 %v2368_v31 }
 0x769   : > { %v1406_v48 = vpop.f32.mrf.mxu1 }
 0x76d   : > { %v3593_v0 = vpop.permute.xlu1 %2357  ;;  %v3616_v43 = vpop.permute.xlu2 %1476 }
 0x76e   : > { %v2343_v32 = vpop.permute.xlu0 %2342  ;;  %v2360_v52 = vunpack.i.h.bf16 %v3593_v0  ;;  %v2359_v25 = vunpack.i.l.bf16 %v3593_v0 }
 0x76f   : > { %v2345_v4 = vunpack.i.h.bf16 %v2343_v32  ;;  %v2344_v37 = vunpack.i.l.bf16 %v2343_v32 }
 0x770   : > { %v1763_v18 = vsel %vm3882_vm6, %v2359_v25, %v2360_v52  ;;  %vm3886_vm6 = vcmp.lt.s32.totalorder %v3885_v38, 16 }
 0x771   : > { %v1799_v42 = vsel %vm1797_vm0, %v2344_v37, %v2345_v4  ;;  %v2028_v8 = vpack.c.bf16 %v1763_v18, %v3546_v21  ;;  %v2369_v21 = vunpack.i.l.bf16 %v2368_v31  ;;  %v3896_v18 = vld [vmem:[#allocation8_spill] sm:$0xff] }
 0x772   : > { %v1805_v29 = vsel %vm3875_vm9, %v1799_v42, 0.0 }
 0x773   : > { %v1848_v55 = vpack.c.bf16 %v1805_v29, %v1805_v29  ;;  %v1780_v29 = vsel %vm1779_vm3, %v2370_v59, %v2349_v49 }
 0x775   : > { %v1863_v23 = vsel %vm3794_vm12, %v1848_v55, 0  ;;  %v1782_v55 = vsel %vm1779_vm3, %v2350_v62, %v2369_v21  ;;  %v2388_v62 = vpop.permute.xlu2 %2387  ;;  %vm3899_vm3 = vcmp.lt.s32.totalorder %v3874_v44, 16 }
 0x776   : > { %v2353_v54 = vpop.permute.xlu0 %2352  ;;  %1884 = vmatpush.bf16.msrb.mxu2 %v1863_v23 }
 0x777   : > { %v2355_v28 = vunpack.i.h.bf16 %v2353_v54  ;;  %v2354_v56 = vunpack.i.l.bf16 %v2353_v54 }
 0x779   : > { %v1830_v13 = vsel %vm3876_vm15, %v2354_v56, %v2355_v28  ;;  %vm2027_vm15 = vmpackc.low %vm3875_vm9, %vm3879_vm10  ;;  %vm3887_vm9 = vcmask 916480  }
 0x77a   : > { %v2025_v9 = vpack.c.bf16 %v1830_v13, %v1781_v1  ;;  %vm3888_vm2 = vmmov %vm3887_vm9 }
 0x77c   : > { %2026 = vmatpush.bf16.msk.msrb.mxu2 %vm3603_vm1, %v2025_v9 }
 0x77d   : > { %v2363_v15 = vpop.permute.xlu1 %2362 }
 0x77e   : > { %v2373_v61 = vpop.permute.xlu0 %2372  ;;  %v2365_v3 = vunpack.i.h.bf16 %v2363_v15  ;;  %v2364_v46 = vunpack.i.l.bf16 %v2363_v15 }
 0x77f   : > { %v2375_v53 = vunpack.i.h.bf16 %v2373_v61  ;;  %v2374_v45 = vunpack.i.l.bf16 %v2373_v61  ;;  %v2334_v61 = vunpack.i.l.bf16 %v3506_v7 }
 0x780   : > { %v1798_v35 = vsel %vm1797_vm0, %v2365_v3, %v2344_v37  ;;  %v1800_v5 = vsel %vm1797_vm0, %v2345_v4, %v2364_v46  ;;  %2029 = vmatpush.bf16.msk.msrb.mxu2 %vm2027_vm15, %v2028_v8  ;;  %vm1731_vm0 = vcmask 121856   ;;  %v3889_v37 = vld [vmem:[#allocation2_spill] sm:$0xff]  ;;  %v2390_v46 = vunpack.i.h.bf16 %v2388_v62 }
 0x781   : > { %v1804_v17 = vsel %vm3884_vm14, %v1798_v35, 0.0  ;;  %v1806_v14 = vsel %vm3886_vm6, %v1800_v5, 0.0  ;;  %v1829_v63 = vsel %vm3887_vm9, %v2375_v53, %v2354_v56  ;;  %v1831_v48 = vsel %vm3888_vm2, %v2355_v28, %v2374_v45 }
 0x782   : > { %v1847_v58 = vpack.c.bf16 %v1804_v17, %v1804_v17  ;;  %v1849_v24 = vpack.c.bf16 %v1806_v14, %v1806_v14  ;;  %vm3890_vm15 = vcmp.ge.s32.totalorder %v3889_v37, 0  ;;  %vm3893_vm2 = vcmp.ge.s32.totalorder %v2727_v47, 0 }
 0x783   : > { %vm3631_vm14 = vmpackc.low %vm3879_vm10, %vm3890_vm15  ;;  %v2012_v56 = vpack.c.bf16 %v1829_v63, %v1780_v29  ;;  %v2038_v1 = vpack.c.bf16 %v1831_v48, %v1782_v55  ;;  %vm3897_vm9 = vcmask 1039360   ;;  %vm3898_vm15 = vcmask 7168  }
 0x784   : > { %v1860_v39 = vsel %vm3794_vm12, %v1847_v58, 0  ;;  %v1866_v32 = vsel %vm3794_vm12, %v1849_v24, 0  ;;  %vm3640_vm6 = vmpackc.low %vm3879_vm10, %vm3893_vm2  ;;  %v1764_v15 = vsel %vm3897_vm9, %v2360_v52, %v3896_v18  ;;  %vm3900_vm2 = vcmp.ge.s32.totalorder %v3877_v11, 0 }
 0x785   : > { %v2383_v4 = vpop.permute.xlu1 %2382  ;;  %1871 = vmatpush.bf16.msrb.mxu1 %v1860_v39  ;;  %1897 = vmatpush.bf16.msrb.mxu3 %v1866_v32  ;;  %vm2030_vm12 = vmpackc.low %vm3900_vm2, %vm3899_vm3  ;;  %vm3901_vm9 = vcmp.lt.s32.totalorder %v3885_v38, 16  ;;  %v2042_v52 = vpack.c.bf16 %v1764_v15, %v2613_v40  ;;  %v2389_v53 = vunpack.i.l.bf16 %v2388_v62  ;;  %v2339_v35 = vunpack.i.l.bf16 %v3508_v41  ;;  %v1808_v39 = vpop.permute.xlu2 %1807 }
 0x786   : > { %v2378_v31 = vpop.permute.xlu0 %2377  ;;  %v2385_v23 = vunpack.i.h.bf16 %v2383_v4  ;;  %v2384_v54 = vunpack.i.l.bf16 %v2383_v4  ;;  %vm3904_vm3 = vcmp.ge.s32.totalorder %v2727_v47, 0  ;;  %v2335_v40 = vunpack.i.h.bf16 %v3506_v7  ;;  %v3907_v7 = vld [vmem:[#allocation3_spill] sm:$0xff] }
 0x787   : > { %v2380_v13 = vunpack.i.h.bf16 %v2378_v31  ;;  %v2379_v9 = vunpack.i.l.bf16 %v2378_v31  ;;  %v1715_v41 = vsel %vm1713_vm13, %v2389_v53, %v2390_v46  ;;  %v1481_v24 = vsel %vm1478_vm5, %v2325_v27, %v3616_v43 }
 0x788   : > { %v1748_v49 = vsel %vm3898_vm15, %v2384_v54, %v2385_v23  ;;  %vm2041_vm15 = vmpackc.low %vm3901_vm9, %vm3164_vm4  ;;  %v1749_v44 = vsel %vm3902_vm7, %v2385_v23, %v3584_v57  ;;  %vm3905_vm7 = vcmask 1039360   ;;  %v1505_v63 = vsel %vm1418_vm11, %v3534_v26, 0.0  ;;  %v3918_v23 = vld [vmem:[#allocation7_spill] sm:$0xff] }
 0x789   : > { %v1733_v8 = vsel %vm1731_vm0, %v2379_v9, %v2380_v13  ;;  %2013 = vmatpush.bf16.msk.msrb.mxu1 %vm3631_vm14, %v2012_v56  ;;  %2039 = vmatpush.bf16.msk.msrb.mxu3 %vm3640_vm6, %v2038_v1  ;;  %v1734_v45 = vsel %vm1731_vm0, %v2380_v13, %v2334_v61  ;;  %vm3903_vm4 = vmmov %vm3901_vm9  ;;  %v1732_v21 = vsel %vm1731_vm0, %v2335_v40, %v2379_v9  ;;  %vm3910_vm0 = vcmp.ge.s32.totalorder %v3889_v37, 0  ;;  %v3917_v37 = vld [vmem:[#allocation11_spill] sm:$0xff]  ;;  %v3919_v1 = vld [vmem:[#allocation10_spill] sm:$0xff] }
 0x78a   : > { %v2031_v3 = vpack.c.bf16 %v1748_v49, %v1733_v8  ;;  %vm2044_vm2 = vmpackc.low %vm3904_vm3, %vm3903_vm4  ;;  %v2045_v14 = vpack.c.bf16 %v1749_v44, %v1734_v45  ;;  %vm1855_vm3 = vcmask 588800   ;;  %vm3911_vm5 = vcmask 973824  }
 0x78b   : > { %v1445_v2 = vsel %vm3911_vm5, %v2320_v12, %v3588_v50 }
 0x78c   : > { %2032 = vmatpush.bf16.msk.msrb.mxu2 %vm2030_vm12, %v2031_v3  ;;  %vm3906_vm12 = vcmp.lt.s32.totalorder %v3883_v33, 16  ;;  %v1451_v36 = vsel %vm1418_vm11, %v1445_v2, 0.0 }
 0x78d   : > { %v2393_v11 = vpop.permute.xlu1 %2392  ;;  %2043 = vmatpush.bf16.msk.msrb.mxu3 %vm2041_vm15, %v2042_v52  ;;  %vm2014_vm9 = vmpackc.low %vm3906_vm12, %vm3879_vm10  ;;  %vm3908_vm15 = vcmask 7168  }
 0x78e   : > { %v1757_v5 = vpop.permute.xlu0 %1756  ;;  %v2395_v51 = vunpack.i.h.bf16 %v2393_v11  ;;  %v2394_v17 = vunpack.i.l.bf16 %v2393_v11  ;;  %v1747_v58 = vsel %vm3908_vm15, %v3907_v7, %v2384_v54  ;;  %vm3909_vm10 = vmmov %vm3906_vm12 }
 0x78f   : > { %v1762_v57 = vsel %vm3905_vm7, %v1757_v5, %v2359_v25  ;;  %v1701_v25 = vpack.c.bf16 %v3578_v34, %v3578_v34  ;;  %vm2017_vm4 = vmpackc.low %vm3910_vm0, %vm3909_vm10  ;;  %v2018_v27 = vpack.c.bf16 %v1747_v58, %v1732_v21  ;;  %vm3914_vm7 = vcmask 1043456  }
 0x790   : > { %v2015_v59 = vpack.c.bf16 %v1762_v57, %v3554_v30  ;;  %v1817_v38 = vsel %vm1601_vm8, %v2395_v51, %v2339_v35  ;;  %v1816_v47 = vsel %vm1601_vm8, %v2394_v17, %v2395_v51  ;;  %v1716_v30 = vsel %vm1713_vm13, %v2390_v46, %v3586_v6 }
 0x791   : > { %v2034_v0 = vpack.c.bf16 %v1816_v47, %v1715_v41  ;;  %2046 = vmatpush.bf16.msk.msrb.mxu3 %vm2044_vm2, %v2045_v14  ;;  %v2048_v48 = vpack.c.bf16 %v1817_v38, %v1716_v30  ;;  %vm3912_vm2 = vcmp.lt.s32.totalorder %v3464_v22, 16  ;;  %v1580_v6 = vrot.slane %v1505_v63, 4 }
 0x792   : > { %2016 = vmatpush.bf16.msk.msrb.mxu1 %vm2014_vm9, %v2015_v59  ;;  %v1487_v26 = vsel %vm3912_vm2, %v1481_v24, 0.0  ;;  %v1815_v20 = vsel %vm1601_vm8, %v1808_v39, %v2394_v17  ;;  %vm3916_vm8 = vcmask 293888  }
 0x793   : > { %2035 = vmatpush.bf16.msk.msrb.mxu2 %vm3603_vm1, %v2034_v0  ;;  %vm3913_vm1 = vcmask 916480  }
 0x795   : > { %v1706_v34 = vpop.permute.xlu1 %1705  ;;  %2049 = vmatpush.bf16.msk.msrb.mxu3 %vm3640_vm6, %v2048_v48  ;;  %vm3915_vm6 = vmmov %vm3914_vm7 }
 0x796   : > { %v1568_v43 = vpop.permute.xlu0 %1567  ;;  %v1714_v33 = vsel %vm1713_vm13, %v1706_v34, %v2389_v53  ;;  %2019 = vmatpush.bf16.msk.msrb.mxu1 %vm2017_vm4, %v2018_v27  ;;  %2036 = vmatmul.msk.bf16.vlgmr.msrb.gmra.mxu2 %vm1855_vm3, %v1701_v25  ;;  %v1613_v32 = vsel %vm3915_vm6, %v1487_v26, %v1580_v6  ;;  %vm3920_vm13 = vmmov %vm3915_vm6 }
 0x797   : > { %v1571_v12 = vsel %vm3913_vm1, %v2330_v19, %v1568_v43  ;;  %v2021_v22 = vpack.c.bf16 %v1815_v20, %v1714_v33 }
 0x798   : > { %v1610_v50 = vsel %vm3914_vm7, %v1451_v36, %v1571_v12  ;;  %2050 = vmatmul.msk.bf16.vlgmr.msrb.gmra.mxu3 %vm1855_vm3, %v1701_v25 }
 0x799   : > { %v1622_v4 = vpack.c.bf16 %v1613_v32, %v1610_v50 }
 0x79a   : > { %2022 = vmatpush.bf16.msk.msrb.mxu1 %vm3631_vm14, %v2021_v22 }
 0x79b   : > { %1679 = vmatpush.bf16.msrb.mxu0 %v1622_v4 }
 0x79d   : > { %2023 = vmatmul.msk.bf16.vlgmr.msrb.gmra.mxu1 %vm1855_vm3, %v1701_v25  ;;  %v1853_v19 = vpop.permute.xlu1 %1852 }
 0x79e   : > { %2010 = vmatmul.msk.bf16.vlgmr.msrb.gmra.mxu0 %vm3916_vm8, %v3450_v60  ;;  %v221_v16 = vpop.permute.xlu0 %220 }
 0x79f   : > { %v263_v29 = vadd.f32 %v3917_v37, %v221_v16  ;;  %v249_v54 = vadd.f32 %v3918_v23, %v221_v16  ;;  %v277_v13 = vadd.f32 %v3919_v1, %v221_v16 }
 0x819   : > { %v1890_v10 = vpop.f32.mrf.mxu2 }
 0x81a   : > { %v1877_v55 = vpop.f32.mrf.mxu1  ;;  %v1891_v31 = vadd.f32 %v1890_v10, %v1853_v19 }
 0x81b   : > { %v1878_v28 = vadd.f32 %v1877_v55, %v1853_v19  ;;  %v1681_v56 = vpop.f32.mrf.mxu0  ;;  %v1903_v42 = vpop.f32.mrf.mxu3 }
 0x81c   : > { %v1908_v9 = vadd.f32 %v1891_v31, %v263_v29  ;;  %v1904_v18 = vadd.f32 %v1903_v42, %v1853_v19 }
 0x81d   : > { %v1907_v15 = vadd.f32 %v1878_v28, %v249_v54 }
 0x81e   : > { %v1911_v49 = vmax.f32 %v1908_v9, 0.0  ;;  %v1909_v60 = vadd.f32 %v1904_v18, %v277_v13 }
 0x81f   : > { %v1910_v62 = vmax.f32 %v1907_v15, 0.0 }
 0x820   : > { %v1915_v8 = vrot.slane %v1911_v49, 4  ;;  %v1912_v61 = vmax.f32 %v1909_v60, 0.0 }
 0x821   : > { %v1892_v3 = vpop.f32.mrf.mxu2 }
 0x822   : > { %v1916_v52 = vsel %vm3920_vm13, %v1910_v62, %v1915_v8  ;;  %1919 = vst [vmem:[%s143_s16 + $0x8] sm:$0xf] %v1912_v61  ;;  %v1879_v46 = vpop.f32.mrf.mxu1 }
 0x823   : > { %1918 = vst [vmem:[%s143_s16] sm:$0xff] %v1916_v52  ;;  %v1683_v53 = vpop.f32.mrf.mxu0  ;;  %v1905_v45 = vpop.f32.mrf.mxu3 }
 0x824 PF: > { %s12_s9 = sadd.s32 1, %s2403_s9  }
 0x825   : > { %p9_p4 = scmp.ge.s32.totalorder %s12_s9, 4  }
 0x827   :  { %11 = sbr.rel (!%p9_p4) target bundleno = 1 (0x1), region = 59 }

</bundles_post_ra>
